<compile_context>
chip_gen: v6e
topology: v6e:2x2x1
jax: 0.10.0
libtpu: 0.0.40
codegen_flags: <defaults>
</compile_context>

<pallas_src>
import functools

import jax
import jax.numpy as jnp
from jax import lax
from jax.experimental import pallas as pl
from jax.experimental.pallas import tpu as pltpu


def _ffnn_fused_kernel(*refs, n_layers: int):
    """Whole FFNN for one batch tile; activations never leave the core.

    refs = (x_ref, w0, b0, ..., w_{n-2}, b_{n-2}, w_outT, b_out, o_ref)
      layer 0        (inp): Linear, no activation
      layers 1..n-2  (hid): Linear + ReLU
      layer n-1      (out): Linear(final_dim, 1); its weight is passed already
                            TRANSPOSED as (1, final_dim) so the result is a
                            lane-dense (1, tm) row instead of a (tm, 1) column.
    """
    x_ref = refs[0]
    o_ref = refs[-1]
    wb = refs[1:-1]

    h = x_ref[...]                                   # (tm, in_dim), native dtype
    for i in range(n_layers - 1):
        w_ref = wb[2 * i]
        b_ref = wb[2 * i + 1]
        lhs = h if h.dtype == w_ref.dtype else h.astype(w_ref.dtype)
        h = jnp.dot(lhs, w_ref[...], preferred_element_type=jnp.float32)
        h = h + b_ref[...].astype(jnp.float32)       # f32 bias add
        if i > 0:                                    # ReLU only on hidden layers
            h = jnp.maximum(h, 0.0)

    # Final layer: (1, K) x (tm, K)^T -> (1, tm) lane-dense output row.
    wt_ref = wb[-2]                                  # (1, final_dim)
    bt_ref = wb[-1]                                  # (1, 1)
    rhs = h if h.dtype == wt_ref.dtype else h.astype(wt_ref.dtype)
    y = lax.dot_general(
        wt_ref[...], rhs,
        dimension_numbers=(((1,), (1,)), ((), ())),
        preferred_element_type=jnp.float32)          # (1, tm)
    y = y + bt_ref[...].astype(jnp.float32)
    o_ref[...] = y.astype(o_ref.dtype)


def _vmem_budget_bytes():
    """Generation-aware VMEM cap: ~3/4 physical (~48 MiB v7x, ~96 MiB v5e/v6e)."""
    try:
        cap = int(pltpu.get_tpu_info().vmem_capacity_bytes)
    except Exception:
        cap = 64 << 20                               # conservative (v7x per-TC)
    return (3 * cap) // 4


def ffnn_forward(params, x):
    """Fused FFNN forward.

    params: list of (w:(K,N), b:(1,N)); last layer must have N == 1.
    x: (M, input_dim).  Returns (M, 1).
    """
    M, in_dim = x.shape
    n_layers = len(params)
    assert n_layers >= 2
    assert params[-1][0].shape[1] == 1, "output layer of the module is Linear(final_dim, 1)"

    itemsize = jnp.dtype(x.dtype).itemsize
    param_bytes = sum(int(w.size) * w.dtype.itemsize + int(b.size) * b.dtype.itemsize
                      for w, b in params)
    max_feat = max([in_dim] + [int(w.shape[1]) for w, _ in params])
    budget = _vmem_budget_bytes()

    def vmem_needed(tm):
        return (param_bytes                          # single-copy resident weights
                + 2 * tm * in_dim * itemsize         # double-buffered input tile
                + 2 * tm * itemsize                  # double-buffered (1, tm) output
                + 4 * tm * max_feat * 4              # live f32 activations + slack
                + (2 << 20))

    # Batch tile: as large as fits (amortize per-step overhead), but produce
    # >= 2 grid steps when M allows so v7x's two TensorCores split the batch.
    # Tiles stay multiples of 128 so the lane-dense output store is unmasked.
    tm = None
    for t in (512, 256, 128):
        if M > t and vmem_needed(t) <= budget:
            tm = t
            break
    if tm is None:
        tm = M          # single tile: block dims equal full array dims (always legal)
    # TODO(synk): if param_bytes alone exceeds the VMEM budget, fall back to
    # per-layer K/N tiling with an f32 VMEM accumulator instead of keeping the
    # whole weight stack resident.

    num_tiles = pl.cdiv(M, tm)
    m_pad = num_tiles * tm
    if m_pad != M:
        x = jnp.pad(x, ((0, m_pad - M), (0, 0)))     # zero rows; sliced off below

    # Grid-invariant weights/biases: whole-array VMEM-resident operands
    # (single copy, not part of the double-buffered pipeline).
    resident = pl.BlockSpec(memory_space=pltpu.MemorySpace.VMEM)
    in_specs = [pl.BlockSpec((tm, in_dim), lambda i: (i, 0))]
    flat_args = []
    for li, (w, b) in enumerate(params):
        if li == n_layers - 1:
            w = w.T                                  # (1, final_dim) for lane-dense out
        in_specs += [resident, resident]
        flat_args += [w, b]
    out_spec = pl.BlockSpec((1, tm), lambda i: (0, i))   # lane-dense output rows

    vmem_limit = int(max(min(vmem_needed(tm), budget), min(32 << 20, budget)))

    flops = 2 * M * sum(int(w.shape[0]) * int(w.shape[1]) for w, _ in params)
    bytes_accessed = int(M * in_dim * itemsize + param_bytes + M * itemsize)

    kernel = functools.partial(_ffnn_fused_kernel, n_layers=n_layers)
    y_row = pl.pallas_call(
        kernel,
        out_shape=jax.ShapeDtypeStruct((1, m_pad), x.dtype),
        grid=(num_tiles,),
        in_specs=in_specs,
        out_specs=out_spec,
        compiler_params=pltpu.CompilerParams(
            dimension_semantics=("parallel",),       # megacore-split batch on v7x
            vmem_limit_bytes=vmem_limit,
        ),
        cost_estimate=pl.CostEstimate(
            flops=flops, transcendentals=0, bytes_accessed=bytes_accessed),
    )(x, *flat_args)

    return y_row[0, :M].reshape(M, 1)


def init_ffnn_params(key, input_dim, hid_dim, final_dim, num_layers,
                     dtype=jnp.float32):
    """Deterministic init matching PyTorch nn.Linear default U[-1/sqrt(fan_in), +]."""
    dims = [(input_dim, hid_dim)]                       # self.inp
    dims += [(hid_dim, hid_dim)] * (num_layers - 1)     # self.hid[:-1]
    dims += [(hid_dim, final_dim)]                      # self.hid[-1]
    dims += [(final_dim, 1)]                            # self.out
    params = []
    for (fan_in, fan_out) in dims:
        key, kw, kb = jax.random.split(key, 3)
        bound = 1.0 / jnp.sqrt(jnp.array(fan_in, dtype))
        w = jax.random.uniform(kw, (fan_in, fan_out), dtype, -bound, bound)
        b = jax.random.uniform(kb, (1, fan_out), dtype, -bound, bound)
        params.append((w, b))
    return params


def ffnn_reference(params, x):
    """Pure-JAX reference for correctness check."""
    n = len(params)
    w, b = params[0]
    x = x @ w + b                                   # inp: no act
    for w, b in params[1:n - 1]:
        x = jnp.maximum(x @ w + b, 0.0)             # hid: ReLU
    w, b = params[n - 1]
    return x @ w + b                                # out: no act


if __name__ == "__main__":
    # Lane-/MXU-friendly demo shapes: batch=512 -> two tm=256 grid steps
    # (both v7x TensorCores busy), hidden widths = 256 (fills v6e/v7x MXU).
    batch = 512
    input_dim = 128
    hid_dim = 256
    final_dim = 256
    num_layers = 3

    key = jax.random.PRNGKey(0)
    key_x, key_p = jax.random.split(key)
    x = jax.random.normal(key_x, (batch, input_dim), jnp.float32)
    params = init_ffnn_params(key_p, input_dim, hid_dim, final_dim, num_layers)

    fwd = jax.jit(ffnn_forward)
    y = jax.block_until_ready(fwd(params, x))

    y_ref = ffnn_reference(params, x)
    assert y.shape == (batch, 1), y.shape
    max_err = float(jnp.max(jnp.abs(y - y_ref)))
    assert jnp.allclose(y, y_ref, atol=2e-4, rtol=2e-4), f"mismatch vs ref: {max_err}"

    print("KERNEL_OK")
</pallas_src>

<mosaic_0001>
module attributes {stable_mosaic.version = 11 : i64} {
  func.func @_ffnn_fused_kernel(%arg0: i32, %arg1: memref<256x128xf32, #tpu.memory_space<vmem>>, %arg2: memref<128x256xf32, #tpu.memory_space<vmem>>, %arg3: memref<1x256xf32, #tpu.memory_space<vmem>>, %arg4: memref<256x256xf32, #tpu.memory_space<vmem>>, %arg5: memref<1x256xf32, #tpu.memory_space<vmem>>, %arg6: memref<256x256xf32, #tpu.memory_space<vmem>>, %arg7: memref<1x256xf32, #tpu.memory_space<vmem>>, %arg8: memref<256x256xf32, #tpu.memory_space<vmem>>, %arg9: memref<1x256xf32, #tpu.memory_space<vmem>>, %arg10: memref<1x256xf32, #tpu.memory_space<vmem>>, %arg11: memref<1x1xf32, #tpu.memory_space<vmem>>, %arg12: memref<1x256xf32, #tpu.memory_space<vmem>>) attributes {dimension_semantics = [#tpu.dimension_semantics<parallel>], iteration_bounds = array<i64: 2>, scalar_prefetch = 0 : i64, scratch_operands = 0 : i64, tpu.core_type = #tpu.core_type<tc>, window_params = [{transform_indices = @transform_0, window_bounds = array<i64: 256, 128>}, {pipeline_mode = #tpu.pipeline_mode<synchronous>, transform_indices = @transform_1, window_bounds = array<i64: 128, 256>}, {pipeline_mode = #tpu.pipeline_mode<synchronous>, transform_indices = @transform_2, window_bounds = array<i64: 1, 256>}, {pipeline_mode = #tpu.pipeline_mode<synchronous>, transform_indices = @transform_3, window_bounds = array<i64: 256, 256>}, {pipeline_mode = #tpu.pipeline_mode<synchronous>, transform_indices = @transform_4, window_bounds = array<i64: 1, 256>}, {pipeline_mode = #tpu.pipeline_mode<synchronous>, transform_indices = @transform_5, window_bounds = array<i64: 256, 256>}, {pipeline_mode = #tpu.pipeline_mode<synchronous>, transform_indices = @transform_6, window_bounds = array<i64: 1, 256>}, {pipeline_mode = #tpu.pipeline_mode<synchronous>, transform_indices = @transform_7, window_bounds = array<i64: 256, 256>}, {pipeline_mode = #tpu.pipeline_mode<synchronous>, transform_indices = @transform_8, window_bounds = array<i64: 1, 256>}, {pipeline_mode = #tpu.pipeline_mode<synchronous>, transform_indices = @transform_9, window_bounds = array<i64: 1, 256>}, {pipeline_mode = #tpu.pipeline_mode<synchronous>, transform_indices = @transform_10, window_bounds = array<i64: 1, 1>}, {transform_indices = @transform_11, window_bounds = array<i64: 1, 256>}]} {
    %c0 = arith.constant 0 : index
    %c0_0 = arith.constant 0 : index
    %0 = vector.load %arg1[%c0, %c0_0] : memref<256x128xf32, #tpu.memory_space<vmem>>, vector<256x128xf32>
    %c0_1 = arith.constant 0 : index
    %c0_2 = arith.constant 0 : index
    %1 = vector.load %arg2[%c0_1, %c0_2] : memref<128x256xf32, #tpu.memory_space<vmem>>, vector<128x256xf32>
    %cst = arith.constant dense<0.000000e+00> : vector<256x256xf32>
    %2 = tpu.matmul %0, %1, %cst {dimension_numbers = #tpu.dot_dimension_numbers<[1], [0], [0], [1], [0, 0, 1, 1], [], []>} : vector<256x128xf32>, vector<128x256xf32>, vector<256x256xf32> -> vector<256x256xf32>
    %c0_3 = arith.constant 0 : index
    %c0_4 = arith.constant 0 : index
    %3 = vector.load %arg3[%c0_3, %c0_4] : memref<1x256xf32, #tpu.memory_space<vmem>>, vector<1x256xf32>
    %4 = vector.broadcast %3 : vector<1x256xf32> to vector<256x256xf32>
    %5 = arith.addf %2, %4 : vector<256x256xf32>
    %c0_5 = arith.constant 0 : index
    %c0_6 = arith.constant 0 : index
    %6 = vector.load %arg4[%c0_5, %c0_6] : memref<256x256xf32, #tpu.memory_space<vmem>>, vector<256x256xf32>
    %cst_7 = arith.constant dense<0.000000e+00> : vector<256x256xf32>
    %7 = tpu.matmul %5, %6, %cst_7 {dimension_numbers = #tpu.dot_dimension_numbers<[1], [0], [0], [1], [0, 0, 1, 1], [], []>} : vector<256x256xf32>, vector<256x256xf32>, vector<256x256xf32> -> vector<256x256xf32>
    %c0_8 = arith.constant 0 : index
    %c0_9 = arith.constant 0 : index
    %8 = vector.load %arg5[%c0_8, %c0_9] : memref<1x256xf32, #tpu.memory_space<vmem>>, vector<1x256xf32>
    %9 = vector.broadcast %8 : vector<1x256xf32> to vector<256x256xf32>
    %10 = arith.addf %7, %9 : vector<256x256xf32>
    %cst_10 = arith.constant 0.000000e+00 : f32
    %11 = vector.broadcast %cst_10 : f32 to vector<256x256xf32>
    %12 = arith.maximumf %10, %11 : vector<256x256xf32>
    %c0_11 = arith.constant 0 : index
    %c0_12 = arith.constant 0 : index
    %13 = vector.load %arg6[%c0_11, %c0_12] : memref<256x256xf32, #tpu.memory_space<vmem>>, vector<256x256xf32>
    %cst_13 = arith.constant dense<0.000000e+00> : vector<256x256xf32>
    %14 = tpu.matmul %12, %13, %cst_13 {dimension_numbers = #tpu.dot_dimension_numbers<[1], [0], [0], [1], [0, 0, 1, 1], [], []>} : vector<256x256xf32>, vector<256x256xf32>, vector<256x256xf32> -> vector<256x256xf32>
    %c0_14 = arith.constant 0 : index
    %c0_15 = arith.constant 0 : index
    %15 = vector.load %arg7[%c0_14, %c0_15] : memref<1x256xf32, #tpu.memory_space<vmem>>, vector<1x256xf32>
    %16 = vector.broadcast %15 : vector<1x256xf32> to vector<256x256xf32>
    %17 = arith.addf %14, %16 : vector<256x256xf32>
    %cst_16 = arith.constant 0.000000e+00 : f32
    %18 = vector.broadcast %cst_16 : f32 to vector<256x256xf32>
    %19 = arith.maximumf %17, %18 : vector<256x256xf32>
    %c0_17 = arith.constant 0 : index
    %c0_18 = arith.constant 0 : index
    %20 = vector.load %arg8[%c0_17, %c0_18] : memref<256x256xf32, #tpu.memory_space<vmem>>, vector<256x256xf32>
    %cst_19 = arith.constant dense<0.000000e+00> : vector<256x256xf32>
    %21 = tpu.matmul %19, %20, %cst_19 {dimension_numbers = #tpu.dot_dimension_numbers<[1], [0], [0], [1], [0, 0, 1, 1], [], []>} : vector<256x256xf32>, vector<256x256xf32>, vector<256x256xf32> -> vector<256x256xf32>
    %c0_20 = arith.constant 0 : index
    %c0_21 = arith.constant 0 : index
    %22 = vector.load %arg9[%c0_20, %c0_21] : memref<1x256xf32, #tpu.memory_space<vmem>>, vector<1x256xf32>
    %23 = vector.broadcast %22 : vector<1x256xf32> to vector<256x256xf32>
    %24 = arith.addf %21, %23 : vector<256x256xf32>
    %cst_22 = arith.constant 0.000000e+00 : f32
    %25 = vector.broadcast %cst_22 : f32 to vector<256x256xf32>
    %26 = arith.maximumf %24, %25 : vector<256x256xf32>
    %c0_23 = arith.constant 0 : index
    %c0_24 = arith.constant 0 : index
    %27 = vector.load %arg10[%c0_23, %c0_24] : memref<1x256xf32, #tpu.memory_space<vmem>>, vector<1x256xf32>
    %cst_25 = arith.constant dense<0.000000e+00> : vector<1x256xf32>
    %28 = tpu.matmul %27, %26, %cst_25 {dimension_numbers = #tpu.dot_dimension_numbers<[1], [1], [0], [0], [0, 0, 1, 0], [], []>} : vector<1x256xf32>, vector<256x256xf32>, vector<1x256xf32> -> vector<1x256xf32>
    %c0_26 = arith.constant 0 : index
    %c0_27 = arith.constant 0 : index
    %29 = vector.load %arg11[%c0_26, %c0_27] : memref<1x1xf32, #tpu.memory_space<vmem>>, vector<1x1xf32>
    %30 = vector.broadcast %29 : vector<1x1xf32> to vector<1x256xf32>
    %31 = arith.addf %28, %30 : vector<1x256xf32>
    %c0_28 = arith.constant 0 : index
    %c0_29 = arith.constant 0 : index
    %32 = vector.load %arg12[%c0_28, %c0_29] : memref<1x256xf32, #tpu.memory_space<vmem>>, vector<1x256xf32>
    tpu.vector_store %arg12[%c0_28, %c0_29], %31 {strides = array<i32>} : memref<1x256xf32, #tpu.memory_space<vmem>>, vector<1x256xf32>,
    return
  }
  func.func @transform_0(%arg0: i32) -> (i32, i32) {
    %c0_i32 = arith.constant 0 : i32
    %c0_i32_0 = arith.constant 0 : i32
    return %arg0, %c0_i32 : i32, i32
  }
  func.func @transform_1(%arg0: i32) -> (i32, i32) {
    %c0_i32 = arith.constant 0 : i32
    %c0_i32_0 = arith.constant 0 : i32
    %c0_i32_1 = arith.constant 0 : i32
    return %c0_i32, %c0_i32_0 : i32, i32
  }
  func.func @transform_2(%arg0: i32) -> (i32, i32) {
    %c0_i32 = arith.constant 0 : i32
    %c0_i32_0 = arith.constant 0 : i32
    %c0_i32_1 = arith.constant 0 : i32
    return %c0_i32, %c0_i32_0 : i32, i32
  }
  func.func @transform_3(%arg0: i32) -> (i32, i32) {
    %c0_i32 = arith.constant 0 : i32
    %c0_i32_0 = arith.constant 0 : i32
    %c0_i32_1 = arith.constant 0 : i32
    return %c0_i32, %c0_i32_0 : i32, i32
  }
  func.func @transform_4(%arg0: i32) -> (i32, i32) {
    %c0_i32 = arith.constant 0 : i32
    %c0_i32_0 = arith.constant 0 : i32
    %c0_i32_1 = arith.constant 0 : i32
    return %c0_i32, %c0_i32_0 : i32, i32
  }
  func.func @transform_5(%arg0: i32) -> (i32, i32) {
    %c0_i32 = arith.constant 0 : i32
    %c0_i32_0 = arith.constant 0 : i32
    %c0_i32_1 = arith.constant 0 : i32
    return %c0_i32, %c0_i32_0 : i32, i32
  }
  func.func @transform_6(%arg0: i32) -> (i32, i32) {
    %c0_i32 = arith.constant 0 : i32
    %c0_i32_0 = arith.constant 0 : i32
    %c0_i32_1 = arith.constant 0 : i32
    return %c0_i32, %c0_i32_0 : i32, i32
  }
  func.func @transform_7(%arg0: i32) -> (i32, i32) {
    %c0_i32 = arith.constant 0 : i32
    %c0_i32_0 = arith.constant 0 : i32
    %c0_i32_1 = arith.constant 0 : i32
    return %c0_i32, %c0_i32_0 : i32, i32
  }
  func.func @transform_8(%arg0: i32) -> (i32, i32) {
    %c0_i32 = arith.constant 0 : i32
    %c0_i32_0 = arith.constant 0 : i32
    %c0_i32_1 = arith.constant 0 : i32
    return %c0_i32, %c0_i32_0 : i32, i32
  }
  func.func @transform_9(%arg0: i32) -> (i32, i32) {
    %c0_i32 = arith.constant 0 : i32
    %c0_i32_0 = arith.constant 0 : i32
    %c0_i32_1 = arith.constant 0 : i32
    return %c0_i32, %c0_i32_0 : i32, i32
  }
  func.func @transform_10(%arg0: i32) -> (i32, i32) {
    %c0_i32 = arith.constant 0 : i32
    %c0_i32_0 = arith.constant 0 : i32
    %c0_i32_1 = arith.constant 0 : i32
    return %c0_i32, %c0_i32_0 : i32, i32
  }
  func.func @transform_11(%arg0: i32) -> (i32, i32) {
    %c0_i32 = arith.constant 0 : i32
    %c0_i32_0 = arith.constant 0 : i32
    return %c0_i32, %arg0 : i32, i32
  }
}

</mosaic_0001>

<bundles_post_ra>
// kernel: ffnn_forward.1
= control target key start
LH: loop header
LB: loop body
LE: loop exit
PB: predicated region body
PF: predicated region fallthrough
CT: control target
= control target key end

     0   :  { %s3343_s0 = inlined_call_operand.hbm [shape: f32[512,128], index: 0, kind: input, shape index: {}]   ;;  %s3344_s1 = inlined_call_operand.hbm [shape: f32[128,256], index: 1, kind: input, shape index: {}]   ;;  %s3345_s2 = inlined_call_operand.vmem [shape: f32[1,256], index: 2, kind: input, shape index: {}]   ;;  %s3346_s3 = inlined_call_operand.hbm [shape: f32[256,256], index: 3, kind: input, shape index: {}]   ;;  %s3347_s4 = inlined_call_operand.vmem [shape: f32[1,256], index: 4, kind: input, shape index: {}]   ;;  %s3348_s5 = inlined_call_operand.hbm [shape: f32[256,256], index: 5, kind: input, shape index: {}]   ;;  %s3349_s6 = inlined_call_operand.vmem [shape: f32[1,256], index: 6, kind: input, shape index: {}]   ;;  %s3350_s7 = inlined_call_operand.hbm [shape: f32[256,256], index: 7, kind: input, shape index: {}]   ;;  %s3351_s8 = inlined_call_operand.vmem [shape: f32[1,256], index: 8, kind: input, shape index: {}]   ;;  %s3352_s9 = inlined_call_operand.vmem [shape: f32[1,256], index: 9, kind: input, shape index: {}]   ;;  %s3353_s10 = inlined_call_operand.<no memory space> [shape: f32[1,1], index: 10, kind: input, shape index: {}]   ;;  %s3354_s11 = inlined_call_operand.hbm [shape: f32[1,512], index: 11, kind: output, shape index: {}]  }
   0x1   :  { %3359 = sst [smem:[#allocation17_spill]] %s3344_s1  ;;  %v16_v0 = vstv %s3353_s10 }
   0x2   :  { %3360 = sst [smem:[#allocation18_spill]] %s3346_s3  ;;  %17 = vst [vmem:[#allocation2] sm:$0x1] %v16_v0 }
   0x3   :  { %3361 = sst [smem:[#allocation19_spill]] %s3348_s5 }
   0x4   :  { %3362 = sst [smem:[#allocation20_spill]] %s3350_s7 }
   0x5   :  { %18 = vsyncpa [#allocation4], 0 }
   0x6   :  { %20 = vsyncpa [#allocation4 + $0x1], 0 }
   0x7   :  { %21 = vsyncpa [#allocation7], 0 }
   0x8   :  { %22 = vsyncpa [#allocation10], 0 }
   0x9   :  { %23 = vsyncpa [#allocation5], 0 }
   0xa   :  { %25 = vsyncpa [#allocation5 + $0x1], 0  ;;  %s2631_s19 = smov 0   ;;  %s2633_s20 = smov 0  }
   0xb   :  { %s2635_s21 = smov 0   ;;  %s2637_s22 = smov 0  }
   0xc LB: > { %s2652_s10 = sadd.s32 4294967295, %s2553_s22   ;;  %s2230_s23 = sadd.s32 4294967294, %s2553_s22   ;;  %s2553_s22 = sphi %s2637_s22, %s3385_s22   ;;  %s2549_s21 = sphi %s2635_s21, %s3384_s21   ;;  %s2545_s20 = sphi %s2633_s20, %s3383_s20   ;;  %s2541_s19 = sphi %s2631_s19, %s3382_s19  }
   0xd   : > { %p51_p0 = scmp.ne.s32.totalorder %s2545_s20, %s2541_s19  ;;  %p3355_p1 = scmp.eq.s32.totalorder %s2652_s10, 0 }
   0xe   : > { %p285_p2 = scmp.eq.s32.totalorder %s2652_s10, 1  ;;  %p291_p3 = scmp.eq.s32.totalorder %s2230_s23, 1 }
   0xf   : > { %p2661_p4 = por %p3355_p1, %p51_p0  ;;  %p2231_p5 = scmp.ge.s32.totalorder %s2553_s22, 1 }
  0x10   : > { %p2666_p6 = por %p291_p3, %p51_p0  ;;  %p298_p7 = scmp.lt.s32.totalorder %s2553_s22, 3 }
  0x11   : > { %s3363_s24 = scalar_select %p2661_p4, 1, 0 }
  0x12   : > { %s3364_s25 = scalar_select %p2666_p6, 1, 0 }
  0x13   : > { %p2671_p8 = pnand %p2231_p5, %p298_p7  ;;  %s2555_s27 = smov [#allocation6]  }
  0x14   : > { %s310_s28 = sshll.u32 %s2555_s27, 4  ;;  %s2556_s30 = smov [#allocation9]   ;;  %s311_s28 = int_to_ptr.vmem [resolvable:$true] %s310_s28 }
  0x15   : > { %s3365_s26 = scalar_select %p2671_p8, 1, 0 }
  0x16   : > { %p2274_p9 = pneg %p2671_p8  ;;  %s342_s12 = sshll.u32 %s2556_s30, 4  ;;  %s343_s12 = int_to_ptr.vmem [resolvable:$true] %s342_s12 }
  0x17   : > { %s2557_s13 = smov [#allocation8]   ;;  %s2360_s15 = scalar_lea.vmem %s311_s28, 4096 }
  0x18   : > { %p2680_p11 = pnand %p2274_p9, %p3355_p1  ;;  %s326_s14 = sshll.u32 %s2557_s13, 4  ;;  %s327_s14 = int_to_ptr.vmem [resolvable:$true] %s326_s14 }
  0x19   : > { %p2361_p13 = scmp.ne.s32.totalorder %s311_s28, %s2360_s15  ;;  %p2368_p5 = scmp.lt.s32.totalorder %s311_s28, %s311_s28 }
  0x1a   : > { %p2351_p12 = pneg %p2680_p11  ;;  %p2369_p7 = scmp.lt.s32.totalorder %s2360_s15, %s2360_s15 }
  0x1c   : > { %p2363_p0 = pnand %p2361_p13, %p2351_p12  ;;  %p2370_p9 = por %p2369_p7, %p2368_p5 }
  0x1e   : > { %p2364_p3 = pneg %p2363_p0 }
  0x20   : > { %p2371_p10 = pnand %p2370_p9, %p2364_p3 }
  0x22   : > { %2374 = shalt.err (!%p2371_p10)
}
  0x23   : > { %s2558_s16 = smov 256   ;;  %s2559_s17 = smov 16  }
  0x24   : > { %s3367_s1 = sld [smem:[#allocation17_spill]]  ;;  %s2386_s27 = scalar_lea.vmem %s343_s12, 8192 }
  0x25   : > { %p2387_p13 = scmp.ne.s32.totalorder %s343_s12, %s2386_s27  ;;  %p2394_p3 = scmp.lt.s32.totalorder %s343_s12, %s343_s12 }
  0x26   : > { %p2395_p10 = scmp.lt.s32.totalorder %s2386_s27, %s2386_s27 }
  0x27   : > { %p2389_p0 = pnand %p2387_p13, %p2351_p12 }
  0x28   : > { %p2396_p7 = por %p2395_p10, %p2394_p3 }
  0x29   : > { %p2390_p5 = pneg %p2389_p0 }
  0x2a   : > { %2277 = dma.hbm_to_vmem [thread:$0]  (!%p2680_p11), %s3367_s1, 4096, %s311_s28, [#allocation7], %s2558_s16, %s2558_s16, %s2559_s17  }
  0x2b   : > { %p2397_p9 = pnand %p2396_p7, %p2390_p5 }
  0x2d   : > { %2400 = shalt.err (!%p2397_p9)
}
  0x2e   : > { %s3368_s5 = sld [smem:[#allocation19_spill]]  ;;  %s2412_s28 = scalar_lea.vmem %s327_s14, 8192 }
  0x2f   : > { %p2413_p1 = scmp.ne.s32.totalorder %s327_s14, %s2412_s28  ;;  %p2420_p3 = scmp.lt.s32.totalorder %s327_s14, %s327_s14 }
  0x30   : > { %p2421_p5 = scmp.lt.s32.totalorder %s2412_s28, %s2412_s28 }
  0x31   : > { %p2415_p13 = pnand %p2413_p1, %p2351_p12 }
  0x32   : > { %p2422_p10 = por %p2421_p5, %p2420_p3 }
  0x33   : > { %p2416_p0 = pneg %p2415_p13 }
  0x34   : > { %2283 = dma.hbm_to_vmem [thread:$0]  (!%p2680_p11), %s3368_s5, 8192, %s343_s12, [#allocation10], %s2558_s16, %s2558_s16, %s2559_s17  }
  0x35   : > { %p2423_p7 = pnand %p2422_p10, %p2416_p0 }
  0x37   : > { %2426 = shalt.err (!%p2423_p7)
}
  0x38   : > { %s3369_s3 = sld [smem:[#allocation18_spill]]  ;;  %s2560_s12 = smov [#allocation11]  }
  0x39   : > { %s358_s23 = sshll.u32 %s2560_s12, 4  ;;  %s359_s23 = int_to_ptr.vmem [resolvable:$true] %s358_s23 }
  0x3a   : > { %s2438_s27 = scalar_lea.vmem %s359_s23, 8192  ;;  %p2446_p0 = scmp.lt.s32.totalorder %s359_s23, %s359_s23 }
  0x3b   : > { %p2439_p1 = scmp.ne.s32.totalorder %s359_s23, %s2438_s27  ;;  %p2447_p3 = scmp.lt.s32.totalorder %s2438_s27, %s2438_s27 }
  0x3d   : > { %p2441_p9 = pnand %p2439_p1, %p2351_p12  ;;  %p2448_p5 = por %p2447_p3, %p2446_p0 }
  0x3e   : > { %2280 = dma.hbm_to_vmem [thread:$0]  (!%p2680_p11), %s3369_s3, 8192, %s327_s14, [#allocation7], %s2558_s16, %s2558_s16, %s2559_s17  }
  0x3f   : > { %p2442_p13 = pneg %p2441_p9 }
  0x41   : > { %p2449_p10 = pnand %p2448_p5, %p2442_p13 }
  0x43   : > { %2452 = shalt.err (!%p2449_p10)
}
  0x44   : > { %s3370_s7 = sld [smem:[#allocation20_spill]]  ;;  %s2731_s13 = sadd.s32 1, %s2553_s22  }
  0x45   : > { %s38_s29 = sadd.s32 1, %s2549_s21  ;;  %s35_s28 = ssub.s32 %s2553_s22, %s2731_s13 }
  0x46   : > { %p45_p12 = scmp.ne.s32.totalorder %s2549_s21, %s2545_s20  ;;  %p36_p7 = scmp.eq.s32.totalorder %s35_s28, 0 }
  0x47   : > { %p46_p1 = scmp.eq.s32.totalorder %s2553_s22, 0  ;;  %p2299_p13 = scmp.lt.s32.totalorder %s2553_s22, 2 }
  0x48   : > { %p2741_p9 = por %p285_p2, %p45_p12  ;;  %s381_s12 = sand.u32 1, %s2549_s21  }
  0x49   : > { %s2747_s18 = scalar_select %p36_p7, %s2549_s21, %s38_s29  }
  0x4a   : > { %2286 = dma.hbm_to_vmem [thread:$0]  (!%p2680_p11), %s3370_s7, 8192, %s359_s23, [#allocation10], %s2558_s16, %s2558_s16, %s2559_s17  }
  0x4b   : > { %s3371_s15 = scalar_select %p2741_p9, 1, 0 }
  0x4c   : > { %p47_p0 = por %p46_p1, %p45_p12  ;;  %s2237_s27 = sshll.u32 %s381_s12, 8 }
  0x4d   : > { %s2252_s16 = sshll.u32 %s2553_s22, 12  ;;  %s385_s30 = scalar_lea.vmem [#allocation3], %s2237_s27 }
  0x4e   : > { %s2754_s14 = scalar_lea.hbm %s3343_s0, %s2252_s16  ;;  %s392_s28 = sshll.u32 %s385_s30, 4  ;;  %s2756_s28 = int_to_ptr.vmem [resolvable:$true] %s392_s28 }
  0x4f   : > { %p2758_p2 = pnand %p2299_p13, %p47_p0  ;;  %s2762_s29 = scalar_lea.sflag [#allocation4], %s381_s12 }
  0x50   : > { %s2453_s3 = scalar_lea.hbm %s2754_s14, 4096  ;;  %s2458_s27 = scalar_lea.hbm %s3343_s0, 8192 }
  0x51   : > { %p2454_p11 = scmp.ne.s32.totalorder %s2754_s14, %s2453_s3  ;;  %p2455_p3 = pneg %p2758_p2 }
  0x52   : > { %p2459_p12 = scmp.lt.s32.totalorder %s2754_s14, %s3343_s0  ;;  %p2460_p7 = scmp.lt.s32.totalorder %s2458_s27, %s2453_s3 }
  0x53   : > { %p2456_p5 = pnand %p2455_p3, %p2454_p11 }
  0x54   : > { %p2461_p1 = por %p2460_p7, %p2459_p12 }
  0x55   : > { %p2457_p10 = pneg %p2456_p5 }
  0x57   : > { %p2462_p13 = pnand %p2461_p1, %p2457_p10 }
  0x59   : > { %2465 = shalt.err (!%p2462_p13)
}
  0x5a   : > { %s2466_s12 = scalar_lea.vmem %s2756_s28, 4096  ;;  %s2561_s5 = smov [#allocation3]  }
  0x5b   : > { %p2467_p0 = scmp.ne.s32.totalorder %s2756_s28, %s2466_s12  ;;  %s2471_s7 = sshll.u32 %s2561_s5, 4  ;;  %s2472_s7 = int_to_ptr.vmem [resolvable:$false] %s2471_s7 }
  0x5c   : > { %s2473_s16 = scalar_lea.vmem %s2472_s7, 8192  ;;  %p2474_p5 = scmp.lt.s32.totalorder %s2756_s28, %s2472_s7 }
  0x5d   : > { %p2469_p6 = pnand %p2467_p0, %p2455_p3  ;;  %p2475_p9 = scmp.lt.s32.totalorder %s2473_s16, %s2466_s12 }
  0x5f   : > { %p2470_p11 = pneg %p2469_p6  ;;  %p2476_p4 = por %p2475_p9, %p2474_p5 }
  0x61   : > { %p2477_p8 = pnand %p2476_p4, %p2470_p11 }
  0x63   : > { %2480 = shalt.err (!%p2477_p8)
}
  0x64   : > { %s2562_s3 = smov 128   ;;  %s2563_s17 = smov 8  }
  0x65   : > { %2290 = dma.hbm_to_vmem [thread:$0]  (!%p2758_p2), %s2754_s14, 4096, %s2756_s28, %s2762_s29, %s2562_s3, %s2562_s3, %s2563_s17  }
  0x66   : > { %p3373_p3 = scmp.ne.s32.totalorder %s3365_s26, 0 }
  0x67   : > { %s2786_s5 = sand.u32 (!%p3373_p3), 1, %s2545_s20   ;;  %p3374_p4 = scmp.ne.s32.totalorder (!%p3373_p3), %s3363_s24, 0 }
  0x68   : > { %404 = sbr.rel (%p3373_p3) target bundleno = 1350 (0x546), region = 64  ;;  %s2241_s7 = sshll.u32 (!%p3373_p3), %s2786_s5, 8 }
  0x69   : > { %s407_s27 = scalar_lea.sflag (!%p3373_p3), [#allocation4], %s2786_s5  ;;  %s2790_s23 = scalar_lea.vmem (!%p3373_p3), [#allocation3], %s2241_s7 }
  0x6d   : > { %2524 = dma.done.wait (%p3374_p4), %s407_s27, 4096  }
  0x6e   : > { %2526 = vsyncadd (%p3374_p4), %s407_s27, 4294963200  ;;  %p3375_p6 = scmp.eq.s32.totalorder %s2652_s10, 0 }
  0x70   : > { %2528 = dma.done.wait (%p3375_p6), [#allocation7], 12288   ;;  %p3376_p8 = pmov %p3375_p6 }
  0x71   : > { %p3377_p9 = pmov %p3375_p6 }
  0x72   : > { %2530 = vsyncadd (%p3376_p8), [#allocation7], 4294955008 }
  0x73   : > { %2532 = dma.done.wait (%p3377_p9), [#allocation10], 16384   ;;  %p3378_p2 = pmov %p3375_p6 }
  0x74   : > { %v2564_v1 = vmov 0.0   ;;  %v530_v2 = vld [vmem:[#allocation6 + $0xf8] sm:$0xff]  ;;  %v529_v3 = vld [vmem:[#allocation6 + $0xf0] sm:$0xff]  ;;  %v528_v4 = vld [vmem:[#allocation6 + $0xe8] sm:$0xff]  ;;  %s2246_s17 = sshll.u32 %s2786_s5, 1  ;;  %s2253_s7 = sshll.u32 %s2652_s10, 5 }
  0x75   : > { %2534 = vsyncadd (%p3378_p2), [#allocation10], 4294950912  ;;  %607 = vmatprep.mubr.f32.mxu0 %v2564_v1  ;;  %543 = vmatprep.subr.mxu0 %v530_v2  ;;  %v527_v5 = vld [vmem:[#allocation6 + $0xe0] sm:$0xff]  ;;  %v526_v6 = vld [vmem:[#allocation6 + $0xd8] sm:$0xff]  ;;  %s464_s27 = scalar_lea.vmem [#allocation12], %s2246_s17  ;;  %s2120_s26 = scalar_lea.hbm %s3354_s11, %s2253_s7 }
  0x76   : > { %544 = vmatpush1.msra.mxu0 %v529_v3  ;;  %v525_v7 = vld [vmem:[#allocation6 + $0xd0] sm:$0xff]  ;;  %v524_v8 = vld [vmem:[#allocation6 + $0xc8] sm:$0xff]  ;;  %v523_v9 = vld [vmem:[#allocation6 + $0xc0] sm:$0xff]  ;;  %s2108_s14 = scalar_lea.sflag [#allocation5], %s2786_s5  ;;  %p3379_p12 = scmp.ne.s32.totalorder %s3371_s15, 0 }
  0x77   : > { %545 = vmatprep.subr.mxu0 %v528_v4  ;;  %v522_v10 = vld [vmem:[#allocation6 + $0xb8] sm:$0xff]  ;;  %v521_v11 = vld [vmem:[#allocation6 + $0xb0] sm:$0xff]  ;;  %v520_v12 = vld [vmem:[#allocation6 + $0xa8] sm:$0xff]  ;;  %s2567_s29 = smov [#allocation12]  }
  0x78   : > { %546 = vmatpush1.msra.mxu0 %v527_v5  ;;  %v519_v13 = vld [vmem:[#allocation6 + $0xa0] sm:$0xff]  ;;  %v518_v14 = vld [vmem:[#allocation6 + $0x98] sm:$0xff]  ;;  %v517_v15 = vld [vmem:[#allocation6 + $0x90] sm:$0xff]  ;;  %s2485_s10 = sshll.u32 %s2567_s29, 4  ;;  %s2486_s10 = int_to_ptr.vmem [resolvable:$false] %s2485_s10 }
  0x79   : > { %547 = vmatprep.subr.mxu0 %v526_v6  ;;  %v516_v16 = vld [vmem:[#allocation6 + $0x88] sm:$0xff]  ;;  %v515_v17 = vld [vmem:[#allocation6 + $0x80] sm:$0xff]  ;;  %v514_v18 = vld [vmem:[#allocation6 + $0x78] sm:$0xff]  ;;  %s2487_s30 = scalar_lea.vmem %s2486_s10, 64 }
  0x7a   : > { %548 = vmatpush1.msra.mxu0 %v525_v7  ;;  %v513_v19 = vld [vmem:[#allocation6 + $0x70] sm:$0xff]  ;;  %v512_v20 = vld [vmem:[#allocation6 + $0x68] sm:$0xff]  ;;  %v511_v21 = vld [vmem:[#allocation6 + $0x60] sm:$0xff] }
  0x7b   : > { %549 = vmatprep.subr.mxu0 %v524_v8  ;;  %v510_v22 = vld [vmem:[#allocation6 + $0x58] sm:$0xff]  ;;  %v509_v23 = vld [vmem:[#allocation6 + $0x50] sm:$0xff]  ;;  %v508_v24 = vld [vmem:[#allocation6 + $0x48] sm:$0xff] }
  0x7c   : > { %550 = vmatpush1.msra.mxu0 %v523_v9  ;;  %v507_v25 = vld [vmem:[#allocation6 + $0x40] sm:$0xff]  ;;  %v506_v26 = vld [vmem:[#allocation6 + $0x38] sm:$0xff]  ;;  %v505_v27 = vld [vmem:[#allocation6 + $0x30] sm:$0xff] }
  0x7d   : > { %551 = vmatprep.subr.mxu0 %v522_v10  ;;  %v504_v28 = vld [vmem:[#allocation6 + $0x28] sm:$0xff]  ;;  %v503_v29 = vld [vmem:[#allocation6 + $0x20] sm:$0xff]  ;;  %v502_v30 = vld [vmem:[#allocation6 + $0x18] sm:$0xff] }
  0x7e   : > { %552 = vmatpush1.msra.mxu0 %v521_v11  ;;  %v501_v31 = vld [vmem:[#allocation6 + $0x10] sm:$0xff]  ;;  %v500_v32 = vld [vmem:[#allocation6 + $0x8] sm:$0xff]  ;;  %v499_v33 = vld [vmem:[#allocation6] sm:$0xff] }
  0x7f   : > { %553 = vmatprep.subr.mxu0 %v520_v12  ;;  %v831_v34 = vld [vmem:[#allocation8 + $0xf8] sm:$0xff]  ;;  %v830_v35 = vld [vmem:[#allocation8 + $0xf0] sm:$0xff]  ;;  %v829_v36 = vld [vmem:[#allocation8 + $0xe8] sm:$0xff] }
  0x80   : > { %554 = vmatpush1.msra.mxu0 %v519_v13  ;;  %v467_v37 = vld [vmem:[%s2790_s23] sm:$0xff]  ;;  %876 = vmatprep.subr.mxu1 %v831_v34  ;;  %v827_v39 = vld [vmem:[#allocation8 + $0xd8] sm:$0xff]  ;;  %v826_v40 = vld [vmem:[#allocation8 + $0xd0] sm:$0xff] }
  0x81   : > { %555 = vmatprep.subr.mxu0 %v518_v14  ;;  %v828_v38 = vld [vmem:[#allocation8 + $0xe0] sm:$0xff]  ;;  %877 = vmatpush1.msra.mxu1 %v830_v35  ;;  %v825_v41 = vld [vmem:[#allocation8 + $0xc8] sm:$0xff]  ;;  %v823_v44 = vld [vmem:[#allocation8 + $0xb8] sm:$0xff] }
  0x82   : > { %556 = vmatpush1.msra.mxu0 %v517_v15  ;;  %878 = vmatprep.subr.mxu1 %v829_v36  ;;  %v468_v42 = vld [vmem:[%s2790_s23 + $0x8] sm:$0xff]  ;;  %v824_v43 = vld [vmem:[#allocation8 + $0xc0] sm:$0xff]  ;;  %v822_v45 = vld [vmem:[#allocation8 + $0xb0] sm:$0xff] }
  0x83   : > { %557 = vmatprep.subr.mxu0 %v516_v16  ;;  %879 = vmatpush1.msra.mxu1 %v828_v38  ;;  %v821_v46 = vld [vmem:[#allocation8 + $0xa8] sm:$0xff]  ;;  %v469_v47 = vld [vmem:[%s2790_s23 + $0x10] sm:$0xff]  ;;  %v820_v48 = vld [vmem:[#allocation8 + $0xa0] sm:$0xff] }
  0x84   : > { %558 = vmatpush1.msra.mxu0 %v515_v17  ;;  %880 = vmatprep.subr.mxu1 %v827_v39  ;;  %v819_v49 = vld [vmem:[#allocation8 + $0x98] sm:$0xff]  ;;  %v818_v50 = vld [vmem:[#allocation8 + $0x90] sm:$0xff]  ;;  %v817_v51 = vld [vmem:[#allocation8 + $0x88] sm:$0xff] }
  0x85   : > { %559 = vmatprep.subr.mxu0 %v514_v18  ;;  %881 = vmatpush1.msra.mxu1 %v826_v40  ;;  %v470_v52 = vld [vmem:[%s2790_s23 + $0x18] sm:$0xff]  ;;  %v816_v53 = vld [vmem:[#allocation8 + $0x80] sm:$0xff]  ;;  %v814_v55 = vld [vmem:[#allocation8 + $0x70] sm:$0xff] }
  0x86   : > { %560 = vmatpush1.msra.mxu0 %v513_v19  ;;  %882 = vmatprep.subr.mxu1 %v825_v41  ;;  %v815_v54 = vld [vmem:[#allocation8 + $0x78] sm:$0xff]  ;;  %v813_v56 = vld [vmem:[#allocation8 + $0x68] sm:$0xff]  ;;  %v471_v57 = vld [vmem:[%s2790_s23 + $0x20] sm:$0xff] }
  0x87   : > { %561 = vmatprep.subr.mxu0 %v512_v20  ;;  %883 = vmatpush1.msra.mxu1 %v824_v43  ;;  %v812_v58 = vld [vmem:[#allocation8 + $0x60] sm:$0xff]  ;;  %v811_v59 = vld [vmem:[#allocation8 + $0x58] sm:$0xff]  ;;  %v810_v60 = vld [vmem:[#allocation8 + $0x50] sm:$0xff] }
  0x88   : > { %562 = vmatpush1.msra.mxu0 %v511_v21  ;;  %884 = vmatprep.subr.mxu1 %v823_v44  ;;  %v809_v61 = vld [vmem:[#allocation8 + $0x48] sm:$0xff]  ;;  %v808_v63 = vld [vmem:[#allocation8 + $0x40] sm:$0xff]  ;;  %v807_v0 = vld [vmem:[#allocation8 + $0x38] sm:$0xff] }
  0x89   : > { %563 = vmatprep.subr.mxu0 %v510_v22  ;;  %885 = vmatpush1.msra.mxu1 %v822_v45  ;;  %v472_v62 = vld [vmem:[%s2790_s23 + $0x28] sm:$0xff]  ;;  %v806_v2 = vld [vmem:[#allocation8 + $0x30] sm:$0xff]  ;;  %v804_v5 = vld [vmem:[#allocation8 + $0x20] sm:$0xff] }
  0x8a   : > { %564 = vmatpush1.msra.mxu0 %v509_v23  ;;  %886 = vmatprep.subr.mxu1 %v821_v46  ;;  %v805_v3 = vld [vmem:[#allocation8 + $0x28] sm:$0xff]  ;;  %v473_v4 = vld [vmem:[%s2790_s23 + $0x30] sm:$0xff]  ;;  %v803_v6 = vld [vmem:[#allocation8 + $0x18] sm:$0xff] }
  0x8b   : > { %565 = vmatprep.subr.mxu0 %v508_v24  ;;  %887 = vmatpush1.msra.mxu1 %v820_v48  ;;  %v802_v7 = vld [vmem:[#allocation8 + $0x10] sm:$0xff]  ;;  %v801_v8 = vld [vmem:[#allocation8 + $0x8] sm:$0xff]  ;;  %v474_v9 = vld [vmem:[%s2790_s23 + $0x38] sm:$0xff] }
  0x8c   : > { %566 = vmatpush1.msra.mxu0 %v507_v25  ;;  %888 = vmatprep.subr.mxu1 %v819_v49  ;;  %v800_v10 = vld [vmem:[#allocation8] sm:$0xff]  ;;  %v863_v11 = vld [vmem:[#allocation8 + $0x1f8] sm:$0xff]  ;;  %v862_v12 = vld [vmem:[#allocation8 + $0x1f0] sm:$0xff] }
  0x8d   : > { %567 = vmatprep.subr.mxu0 %v506_v26  ;;  %889 = vmatpush1.msra.mxu1 %v818_v50  ;;  %v861_v13 = vld [vmem:[#allocation8 + $0x1e8] sm:$0xff]  ;;  %v475_v14 = vld [vmem:[%s2790_s23 + $0x40] sm:$0xff]  ;;  %v859_v16 = vld [vmem:[#allocation8 + $0x1d8] sm:$0xff] }
  0x8e   : > { %568 = vmatpush1.msra.mxu0 %v505_v27  ;;  %890 = vmatprep.subr.mxu1 %v817_v51  ;;  %v860_v15 = vld [vmem:[#allocation8 + $0x1e0] sm:$0xff]  ;;  %v858_v17 = vld [vmem:[#allocation8 + $0x1d0] sm:$0xff]  ;;  %v857_v18 = vld [vmem:[#allocation8 + $0x1c8] sm:$0xff] }
  0x8f   : > { %569 = vmatprep.subr.mxu0 %v504_v28  ;;  %891 = vmatpush1.msra.mxu1 %v816_v53  ;;  %v476_v19 = vld [vmem:[%s2790_s23 + $0x48] sm:$0xff]  ;;  %v856_v20 = vld [vmem:[#allocation8 + $0x1c0] sm:$0xff]  ;;  %v855_v21 = vld [vmem:[#allocation8 + $0x1b8] sm:$0xff] }
  0x90   : > { %570 = vmatpush1.msra.mxu0 %v503_v29  ;;  %892 = vmatprep.subr.mxu1 %v815_v54  ;;  %v854_v22 = vld [vmem:[#allocation8 + $0x1b0] sm:$0xff]  ;;  %v853_v23 = vld [vmem:[#allocation8 + $0x1a8] sm:$0xff]  ;;  %v852_v25 = vld [vmem:[#allocation8 + $0x1a0] sm:$0xff] }
  0x91   : > { %571 = vmatprep.subr.mxu0 %v502_v30  ;;  %893 = vmatpush1.msra.mxu1 %v814_v55  ;;  %v477_v24 = vld [vmem:[%s2790_s23 + $0x50] sm:$0xff]  ;;  %v851_v26 = vld [vmem:[#allocation8 + $0x198] sm:$0xff]  ;;  %v849_v28 = vld [vmem:[#allocation8 + $0x188] sm:$0xff] }
  0x92   : > { %572 = vmatpush1.msra.mxu0 %v501_v31  ;;  %894 = vmatprep.subr.mxu1 %v813_v56  ;;  %v850_v27 = vld [vmem:[#allocation8 + $0x190] sm:$0xff]  ;;  %v478_v29 = vld [vmem:[%s2790_s23 + $0x58] sm:$0xff]  ;;  %v848_v30 = vld [vmem:[#allocation8 + $0x180] sm:$0xff] }
  0x93   : > { %573 = vmatprep.subr.mxu0 %v500_v32  ;;  %895 = vmatpush1.msra.mxu1 %v812_v58  ;;  %v847_v31 = vld [vmem:[#allocation8 + $0x178] sm:$0xff]  ;;  %v846_v32 = vld [vmem:[#allocation8 + $0x170] sm:$0xff]  ;;  %v479_v34 = vld [vmem:[%s2790_s23 + $0x60] sm:$0xff] }
  0x94   : > { %574 = vmatpush1.msra.mxu0 %v499_v33  ;;  %896 = vmatprep.subr.mxu1 %v811_v59  ;;  %v845_v33 = vld [vmem:[#allocation8 + $0x168] sm:$0xff]  ;;  %v844_v35 = vld [vmem:[#allocation8 + $0x160] sm:$0xff]  ;;  %v843_v36 = vld [vmem:[#allocation8 + $0x158] sm:$0xff] }
  0x95   : > { %608 = vmatmul.mubr.f32.vlgmr.msra.gmra.mxu0 %v467_v37  ;;  %897 = vmatpush1.msra.mxu1 %v810_v60  ;;  %v842_v37 = vld [vmem:[#allocation8 + $0x150] sm:$0xff]  ;;  %v841_v38 = vld [vmem:[#allocation8 + $0x148] sm:$0xff]  ;;  %v840_v40 = vld [vmem:[#allocation8 + $0x140] sm:$0xff] }
  0x96   : > { %613 = vmatprep.mubr.f32.mxu0 %v2564_v1  ;;  %898 = vmatprep.subr.mxu1 %v809_v61  ;;  %v480_v39 = vld [vmem:[%s2790_s23 + $0x68] sm:$0xff]  ;;  %v839_v41 = vld [vmem:[#allocation8 + $0x138] sm:$0xff]  ;;  %v481_v43 = vld [vmem:[%s2790_s23 + $0x70] sm:$0xff] }
  0x97   : > { %899 = vmatpush1.msra.mxu1 %v808_v63  ;;  %v482_v44 = vld [vmem:[%s2790_s23 + $0x78] sm:$0xff]  ;;  %v483_v45 = vld [vmem:[%s2790_s23 + $0x80] sm:$0xff]  ;;  %v837_v46 = vld [vmem:[#allocation8 + $0x128] sm:$0xff] }
  0x98   : > { %900 = vmatprep.subr.mxu1 %v807_v0  ;;  %v484_v48 = vld [vmem:[%s2790_s23 + $0x88] sm:$0xff]  ;;  %v835_v49 = vld [vmem:[#allocation8 + $0x118] sm:$0xff]  ;;  %v834_v50 = vld [vmem:[#allocation8 + $0x110] sm:$0xff] }
  0x99   : > { %614 = vmatmul.mubr.f32.gmra.mxu0 %v468_v42  ;;  %901 = vmatpush1.msra.mxu1 %v806_v2  ;;  %v838_v42 = vld [vmem:[#allocation8 + $0x130] sm:$0xff]  ;;  %v833_v51 = vld [vmem:[#allocation8 + $0x108] sm:$0xff]  ;;  %v486_v54 = vld [vmem:[%s2790_s23 + $0x98] sm:$0xff] }
  0x9a   : > { %619 = vmatprep.mubr.f32.mxu0 %v2564_v1  ;;  %902 = vmatprep.subr.mxu1 %v805_v3  ;;  %v485_v53 = vld [vmem:[%s2790_s23 + $0x90] sm:$0xff]  ;;  %v487_v55 = vld [vmem:[%s2790_s23 + $0xa0] sm:$0xff]  ;;  %v488_v56 = vld [vmem:[%s2790_s23 + $0xa8] sm:$0xff] }
  0x9b   : > { %903 = vmatpush1.msra.mxu1 %v804_v5  ;;  %v490_v58 = vld [vmem:[%s2790_s23 + $0xb8] sm:$0xff]  ;;  %v491_v59 = vld [vmem:[%s2790_s23 + $0xc0] sm:$0xff]  ;;  %v492_v60 = vld [vmem:[%s2790_s23 + $0xc8] sm:$0xff] }
  0x9c   : > { %904 = vmatprep.subr.mxu1 %v803_v6  ;;  %v493_v61 = vld [vmem:[%s2790_s23 + $0xd0] sm:$0xff]  ;;  %v495_v63 = vld [vmem:[%s2790_s23 + $0xe0] sm:$0xff]  ;;  %v496_v0 = vld [vmem:[%s2790_s23 + $0xe8] sm:$0xff] }
  0x9d   : > { %620 = vmatmul.mubr.f32.gmra.mxu0 %v469_v47  ;;  %905 = vmatpush1.msra.mxu1 %v802_v7  ;;  %v836_v47 = vld [vmem:[#allocation8 + $0x120] sm:$0xff]  ;;  %v497_v2 = vld [vmem:[%s2790_s23 + $0xf0] sm:$0xff]  ;;  %v498_v3 = vld [vmem:[%s2790_s23 + $0xf8] sm:$0xff] }
  0x9e   : > { %625 = vmatprep.mubr.f32.mxu0 %v2564_v1  ;;  %906 = vmatprep.subr.mxu1 %v801_v8  ;;  %v1227_v5 = vld [vmem:[#allocation9 + $0xf0] sm:$0xff]  ;;  %v1226_v6 = vld [vmem:[#allocation9 + $0xe8] sm:$0xff]  ;;  %v1225_v7 = vld [vmem:[#allocation9 + $0xe0] sm:$0xff] }
  0x9f   : > { %907 = vmatpush1.msra.mxu1 %v800_v10  ;;  %v1224_v8 = vld [vmem:[#allocation9 + $0xd8] sm:$0xff]  ;;  %v1222_v10 = vld [vmem:[#allocation9 + $0xc8] sm:$0xff] }
  0xa0   : > { %908 = vmatprep.subr.mxu1 %v863_v11  ;;  %v1221_v11 = vld [vmem:[#allocation9 + $0xc0] sm:$0xff] }
  0xa1   : > { %626 = vmatmul.mubr.f32.gmra.mxu0 %v470_v52  ;;  %909 = vmatpush2.msra.mxu1 %v862_v12  ;;  %v832_v52 = vld [vmem:[#allocation8 + $0x100] sm:$0xff]  ;;  %v1220_v12 = vld [vmem:[#allocation9 + $0xb8] sm:$0xff] }
  0xa2   : > { %631 = vmatprep.mubr.f32.mxu0 %v2564_v1  ;;  %910 = vmatprep.subr.mxu1 %v861_v13  ;;  %v1218_v13 = vld [vmem:[#allocation9 + $0xa8] sm:$0xff] }
  0xa3   : > { %911 = vmatpush2.msra.mxu1 %v860_v15  ;;  %v1216_v15 = vld [vmem:[#allocation9 + $0x98] sm:$0xff] }
  0xa4   : > { %912 = vmatprep.subr.mxu1 %v859_v16  ;;  %v1215_v16 = vld [vmem:[#allocation9 + $0x90] sm:$0xff] }
  0xa5   : > { %632 = vmatmul.mubr.f32.gmra.mxu0 %v471_v57  ;;  %913 = vmatpush2.msra.mxu1 %v858_v17  ;;  %v489_v57 = vld [vmem:[%s2790_s23 + $0xb0] sm:$0xff]  ;;  %v1214_v17 = vld [vmem:[#allocation9 + $0x88] sm:$0xff] }
  0xa6   : > { %637 = vmatprep.mubr.f32.mxu0 %v2564_v1  ;;  %914 = vmatprep.subr.mxu1 %v857_v18  ;;  %v1213_v18 = vld [vmem:[#allocation9 + $0x80] sm:$0xff] }
  0xa7   : > { %915 = vmatpush2.msra.mxu1 %v856_v20  ;;  %v1211_v20 = vld [vmem:[#allocation9 + $0x70] sm:$0xff] }
  0xa8   : > { %916 = vmatprep.subr.mxu1 %v855_v21  ;;  %v1210_v21 = vld [vmem:[#allocation9 + $0x68] sm:$0xff] }
  0xa9   : > { %638 = vmatmul.mubr.f32.gmra.mxu0 %v472_v62  ;;  %917 = vmatpush2.msra.mxu1 %v854_v22  ;;  %v494_v62 = vld [vmem:[%s2790_s23 + $0xd8] sm:$0xff]  ;;  %v1209_v22 = vld [vmem:[#allocation9 + $0x60] sm:$0xff]  ;;  %s2122_s23 = sshll.u32 %s464_s27, 4  ;;  %s2123_s23 = int_to_ptr.vmem [resolvable:$true] %s2122_s23 }
  0xaa   : > { %643 = vmatprep.mubr.f32.mxu0 %v2564_v1  ;;  %918 = vmatprep.subr.mxu1 %v853_v23  ;;  %v533_v23 = vlaneseq  ;;  %s2481_s28 = scalar_lea.vmem %s2123_s23, 32  ;;  %p2488_p13 = scmp.lt.s32.totalorder %s2123_s23, %s2486_s10 }
  0xab   : > { %919 = vmatpush2.msra.mxu1 %v852_v25  ;;  %v1207_v25 = vld [vmem:[#allocation9 + $0x50] sm:$0xff]  ;;  %p2482_p10 = scmp.ne.s32.totalorder %s2123_s23, %s2481_s28  ;;  %p2489_p0 = scmp.lt.s32.totalorder %s2487_s30, %s2481_s28 }
  0xac   : > { %920 = vmatprep.subr.mxu1 %v851_v26  ;;  %v2869_v26 = vshrl.u32 %v533_v23, 7  ;;  %vm2104_vm0 = vcmp.lt.s32.totalorder %v533_v23, 256 }
  0xad   : > { %644 = vmatmul.mubr.f32.gmra.mxu0 %v473_v4  ;;  %921 = vmatpush2.msra.mxu1 %v850_v27  ;;  %v1228_v4 = vld [vmem:[#allocation9 + $0xf8] sm:$0xff]  ;;  %p2483_p7 = pnand %p2482_p10, %p3379_p12  ;;  %p2490_p11 = por %p2489_p0, %p2488_p13 }
  0xae   : > { %649 = vmatprep.mubr.f32.mxu0 %v2564_v1  ;;  %922 = vmatprep.subr.mxu1 %v849_v28  ;;  %v2872_v27 = vsub.s32 1, %v2869_v26  ;;  %v1206_v28 = vld [vmem:[#allocation9 + $0x48] sm:$0xff] }
  0xaf   : > { %923 = vmatpush2.msra.mxu1 %v848_v30  ;;  %1273 = vmatprep.subr.mxu0 %v1228_v4  ;;  %v2875_v30 = vsub.s32 0, %v2869_v26  ;;  %p2484_p1 = pneg %p2483_p7 }
  0xb0   : > { %924 = vmatprep.subr.mxu1 %v847_v31  ;;  %1274 = vmatpush1.msra.mxu0 %v1227_v5  ;;  %v531_v31 = vld [vmem:[%s3345_s2] sm:$0x3] }
  0xb1   : > { %650 = vmatmul.mubr.f32.gmra.mxu0 %v474_v9  ;;  %925 = vmatpush2.msra.mxu1 %v846_v32  ;;  %v1223_v9 = vld [vmem:[#allocation9 + $0xd0] sm:$0xff]  ;;  %v2881_v32 = vrot.slane %v531_v31, %v2872_v27  ;;  %p2491_p5 = pnand %p2490_p11, %p2484_p1 }
  0xb2   : > { %655 = vmatprep.mubr.f32.mxu0 %v2564_v1  ;;  %926 = vmatprep.subr.mxu1 %v845_v33  ;;  %v1204_v33 = vld [vmem:[#allocation9 + $0x38] sm:$0xff] }
  0xb3   : > { %927 = vmatpush2.msra.mxu1 %v844_v35  ;;  %1275 = vmatprep.subr.mxu0 %v1226_v6  ;;  %v2884_v35 = vrot.slane %v531_v31, %v2875_v30  ;;  %v1250_v6 = vld [vmem:[#allocation9 + $0x1a8] sm:$0xff] }
  0xb4   : > { %928 = vmatprep.subr.mxu1 %v843_v36  ;;  %1276 = vmatpush1.msra.mxu0 %v1225_v7  ;;  %v1249_v7 = vld [vmem:[#allocation9 + $0x1a0] sm:$0xff] }
  0xb5   : > { %656 = vmatmul.mubr.f32.gmra.mxu0 %v475_v14  ;;  %929 = vmatpush2.msra.mxu1 %v842_v37  ;;  %v1217_v14 = vld [vmem:[#allocation9 + $0xa0] sm:$0xff] }
  0xb6   : > { %661 = vmatprep.mubr.f32.mxu0 %v2564_v1  ;;  %930 = vmatprep.subr.mxu1 %v841_v38  ;;  %v1202_v38 = vld [vmem:[#allocation9 + $0x28] sm:$0xff] }
  0xb7   : > { %931 = vmatpush2.msra.mxu1 %v840_v40  ;;  %1277 = vmatprep.subr.mxu0 %v1224_v8  ;;  %v1200_v40 = vld [vmem:[#allocation9 + $0x18] sm:$0xff] }
  0xb8   : > { %932 = vmatprep.subr.mxu1 %v839_v41  ;;  %1278 = vmatpush1.msra.mxu0 %v1223_v9  ;;  %v1248_v9 = vld [vmem:[#allocation9 + $0x198] sm:$0xff] }
  0xb9   : > { %662 = vmatmul.mubr.f32.gmra.mxu0 %v476_v19  ;;  %933 = vmatpush2.msra.mxu1 %v838_v42  ;;  %v1212_v19 = vld [vmem:[#allocation9 + $0x78] sm:$0xff]  ;;  %v1199_v42 = vld [vmem:[#allocation9 + $0x10] sm:$0xff] }
  0xba   : > { %667 = vmatprep.mubr.f32.mxu0 %v2564_v1  ;;  %934 = vmatprep.subr.mxu1 %v837_v46  ;;  %v1197_v46 = vld [vmem:[#allocation9] sm:$0xff] }
  0xbb   : > { %935 = vmatpush2.msra.mxu1 %v836_v47  ;;  %1279 = vmatprep.subr.mxu0 %v1222_v10 }
  0xbc   : > { %936 = vmatprep.subr.mxu1 %v835_v49  ;;  %1280 = vmatpush1.msra.mxu0 %v1221_v11  ;;  %v1247_v11 = vld [vmem:[#allocation9 + $0x190] sm:$0xff] }
  0xbd   : > { %668 = vmatmul.mubr.f32.gmra.mxu0 %v477_v24  ;;  %937 = vmatpush2.msra.mxu1 %v834_v50  ;;  %v1208_v24 = vld [vmem:[#allocation9 + $0x58] sm:$0xff]  ;;  %v1259_v50 = vld [vmem:[#allocation9 + $0x1f0] sm:$0xff] }
  0xbe   : > { %673 = vmatprep.mubr.f32.mxu0 %v2564_v1  ;;  %938 = vmatprep.subr.mxu1 %v833_v51 }
  0xbf   : > { %939 = vmatpush2.msra.mxu1 %v832_v52  ;;  %1281 = vmatprep.subr.mxu0 %v1220_v12 }
  0xc1   : > { %674 = vmatmul.mubr.f32.gmra.mxu0 %v478_v29  ;;  %v1205_v29 = vld [vmem:[#allocation9 + $0x40] sm:$0xff] }
  0xc2   : > { %679 = vmatprep.mubr.f32.mxu0 %v2564_v1 }
  0xc5   : > { %680 = vmatmul.mubr.f32.gmra.mxu0 %v479_v34  ;;  %v1203_v34 = vld [vmem:[#allocation9 + $0x30] sm:$0xff] }
  0xc6   : > { %685 = vmatprep.mubr.f32.mxu0 %v2564_v1 }
  0xc9   : > { %686 = vmatmul.mubr.f32.gmra.mxu0 %v480_v39  ;;  %v1201_v39 = vld [vmem:[#allocation9 + $0x20] sm:$0xff] }
  0xca   : > { %691 = vmatprep.mubr.f32.mxu0 %v2564_v1 }
  0xcd   : > { %692 = vmatmul.mubr.f32.gmra.mxu0 %v481_v43 }
  0xce   : > { %697 = vmatprep.mubr.f32.mxu0 %v2564_v1 }
  0xd1   : > { %698 = vmatmul.mubr.f32.gmra.mxu0 %v482_v44 }
  0xd2   : > { %703 = vmatprep.mubr.f32.mxu0 %v2564_v1 }
  0xd5   : > { %704 = vmatmul.mubr.f32.gmra.mxu0 %v483_v45  ;;  %v1198_v45 = vld [vmem:[#allocation9 + $0x8] sm:$0xff] }
  0xd6   : > { %709 = vmatprep.mubr.f32.mxu0 %v2564_v1 }
  0xd9   : > { %710 = vmatmul.mubr.f32.gmra.mxu0 %v484_v48  ;;  %v1260_v48 = vld [vmem:[#allocation9 + $0x1f8] sm:$0xff] }
  0xda   : > { %715 = vmatprep.mubr.f32.mxu0 %v2564_v1 }
  0xdd   : > { %716 = vmatmul.mubr.f32.gmra.mxu0 %v485_v53  ;;  %v1258_v53 = vld [vmem:[#allocation9 + $0x1e8] sm:$0xff] }
  0xde   : > { %721 = vmatprep.mubr.f32.mxu0 %v2564_v1 }
  0xe1   : > { %722 = vmatmul.mubr.f32.gmra.mxu0 %v486_v54  ;;  %v1257_v54 = vld [vmem:[#allocation9 + $0x1e0] sm:$0xff] }
  0xe2   : > { %727 = vmatprep.mubr.f32.mxu0 %v2564_v1 }
  0xe5   : > { %728 = vmatmul.mubr.f32.gmra.mxu0 %v487_v55 }
  0xe6   : > { %733 = vmatprep.mubr.f32.mxu0 %v2564_v1 }
  0xe9   : > { %734 = vmatmul.mubr.f32.gmra.mxu0 %v488_v56  ;;  %v1256_v56 = vld [vmem:[#allocation9 + $0x1d8] sm:$0xff] }
  0xea   : > { %739 = vmatprep.mubr.f32.mxu0 %v2564_v1 }
  0xed   : > { %740 = vmatmul.mubr.f32.gmra.mxu0 %v489_v57 }
  0xee   : > { %745 = vmatprep.mubr.f32.mxu0 %v2564_v1 }
  0xf1   : > { %746 = vmatmul.mubr.f32.gmra.mxu0 %v490_v58  ;;  %v1255_v58 = vld [vmem:[#allocation9 + $0x1d0] sm:$0xff] }
  0xf2   : > { %751 = vmatprep.mubr.f32.mxu0 %v2564_v1 }
  0xf5   : > { %752 = vmatmul.mubr.f32.gmra.mxu0 %v491_v59 }
  0xf6   : > { %757 = vmatprep.mubr.f32.mxu0 %v2564_v1 }
  0xf9   : > { %758 = vmatmul.mubr.f32.gmra.mxu0 %v492_v60 }
  0xfa   : > { %763 = vmatprep.mubr.f32.mxu0 %v2564_v1 }
  0xfd   : > { %764 = vmatmul.mubr.f32.gmra.mxu0 %v493_v61  ;;  %v1254_v61 = vld [vmem:[#allocation9 + $0x1c8] sm:$0xff] }
  0xfe   : > { %769 = vmatprep.mubr.f32.mxu0 %v2564_v1 }
 0x101   : > { %770 = vmatmul.mubr.f32.gmra.mxu0 %v494_v62  ;;  %v1253_v62 = vld [vmem:[#allocation9 + $0x1c0] sm:$0xff] }
 0x102   : > { %775 = vmatprep.mubr.f32.mxu0 %v2564_v1 }
 0x105   : > { %776 = vmatmul.mubr.f32.gmra.mxu0 %v495_v63 }
 0x106   : > { %781 = vmatprep.mubr.f32.mxu0 %v2564_v1 }
 0x109   : > { %782 = vmatmul.mubr.f32.gmra.mxu0 %v496_v0  ;;  %v1252_v0 = vld [vmem:[#allocation9 + $0x1b8] sm:$0xff] }
 0x10a   : > { %787 = vmatprep.mubr.f32.mxu0 %v2564_v1 }
 0x10d   : > { %788 = vmatmul.mubr.f32.gmra.mxu0 %v497_v2 }
 0x10e   : > { %793 = vmatprep.mubr.f32.mxu0 %v2564_v1  ;;  %v1219_v1 = vld [vmem:[#allocation9 + $0xb0] sm:$0xff] }
 0x10f   : > { %1282 = vmatpush1.msra.mxu0 %v1219_v1 }
 0x110   : > { %1283 = vmatprep.subr.mxu0 %v1218_v13  ;;  %v1246_v13 = vld [vmem:[#allocation9 + $0x188] sm:$0xff] }
 0x111   : > { %794 = vmatmul.mubr.f32.gmra.mxu0 %v498_v3  ;;  %v1251_v3 = vld [vmem:[#allocation9 + $0x1b0] sm:$0xff] }
 0x112   : > { %1284 = vmatpush1.msra.mxu0 %v1217_v14  ;;  %v1245_v14 = vld [vmem:[#allocation9 + $0x180] sm:$0xff] }
 0x113   : > { %1285 = vmatprep.subr.mxu0 %v1216_v15 }
 0x114   : > { %1286 = vmatpush1.msra.mxu0 %v1215_v16  ;;  %v1244_v16 = vld [vmem:[#allocation9 + $0x178] sm:$0xff] }
 0x115   : > { %1287 = vmatprep.subr.mxu0 %v1214_v17 }
 0x116   : > { %1288 = vmatpush1.msra.mxu0 %v1213_v18  ;;  %v1243_v18 = vld [vmem:[#allocation9 + $0x170] sm:$0xff] }
 0x117   : > { %1289 = vmatprep.subr.mxu0 %v1212_v19 }
 0x118   : > { %1290 = vmatpush1.msra.mxu0 %v1211_v20 }
 0x119   : > { %1291 = vmatprep.subr.mxu0 %v1210_v21  ;;  %v1242_v21 = vld [vmem:[#allocation9 + $0x168] sm:$0xff] }
 0x11a   : > { %1292 = vmatpush1.msra.mxu0 %v1209_v22  ;;  %v1241_v22 = vld [vmem:[#allocation9 + $0x160] sm:$0xff] }
 0x11b   : > { %1293 = vmatprep.subr.mxu0 %v1208_v24 }
 0x11c   : > { %1294 = vmatpush1.msra.mxu0 %v1207_v25  ;;  %v1240_v25 = vld [vmem:[#allocation9 + $0x158] sm:$0xff] }
 0x11d   : > { %1295 = vmatprep.subr.mxu0 %v1206_v28 }
 0x11e   : > { %1296 = vmatpush1.msra.mxu0 %v1205_v29  ;;  %v1239_v29 = vld [vmem:[#allocation9 + $0x150] sm:$0xff] }
 0x11f   : > { %1297 = vmatprep.subr.mxu0 %v1204_v33 }
 0x120   : > { %1298 = vmatpush1.msra.mxu0 %v1203_v34  ;;  %v1238_v34 = vld [vmem:[#allocation9 + $0x148] sm:$0xff] }
 0x121   : > { %1299 = vmatprep.subr.mxu0 %v1202_v38  ;;  %v1236_v38 = vld [vmem:[#allocation9 + $0x138] sm:$0xff] }
 0x122   : > { %1300 = vmatpush1.msra.mxu0 %v1201_v39 }
 0x123   : > { %1301 = vmatprep.subr.mxu0 %v1200_v40  ;;  %v1235_v40 = vld [vmem:[#allocation9 + $0x130] sm:$0xff] }
 0x124   : > { %1302 = vmatpush1.msra.mxu0 %v1199_v42 }
 0x125   : > { %1303 = vmatprep.subr.mxu0 %v1198_v45 }
 0x126   : > { %1304 = vmatpush1.msra.mxu0 %v1197_v46 }
 0x127   : > { %1305 = vmatprep.subr.mxu0 %v1260_v48 }
 0x128   : > { %1306 = vmatpush2.msra.mxu0 %v1259_v50 }
 0x129   : > { %1307 = vmatprep.subr.mxu0 %v1258_v53 }
 0x12a   : > { %1308 = vmatpush2.msra.mxu0 %v1257_v54 }
 0x12b   : > { %1309 = vmatprep.subr.mxu0 %v1256_v56 }
 0x12c   : > { %1310 = vmatpush2.msra.mxu0 %v1255_v58 }
 0x12d   : > { %1311 = vmatprep.subr.mxu0 %v1254_v61 }
 0x12e   : > { %1312 = vmatpush2.msra.mxu0 %v1253_v62 }
 0x12f   : > { %1313 = vmatprep.subr.mxu0 %v1252_v0 }
 0x130   : > { %1314 = vmatpush2.msra.mxu0 %v1251_v3 }
 0x131   : > { %1315 = vmatprep.subr.mxu0 %v1250_v6 }
 0x132   : > { %1316 = vmatpush2.msra.mxu0 %v1249_v7 }
 0x133   : > { %1317 = vmatprep.subr.mxu0 %v1248_v9 }
 0x134   : > { %1318 = vmatpush2.msra.mxu0 %v1247_v11 }
 0x135   : > { %1319 = vmatprep.subr.mxu0 %v1246_v13 }
 0x136   : > { %1320 = vmatpush2.msra.mxu0 %v1245_v14 }
 0x137   : > { %1321 = vmatprep.subr.mxu0 %v1244_v16 }
 0x138   : > { %1322 = vmatpush2.msra.mxu0 %v1243_v18 }
 0x139   : > { %1323 = vmatprep.subr.mxu0 %v1242_v21  ;;  %v1232_v21 = vld [vmem:[#allocation9 + $0x118] sm:$0xff] }
 0x13a   : > { %1324 = vmatpush2.msra.mxu0 %v1241_v22  ;;  %v1231_v22 = vld [vmem:[#allocation9 + $0x110] sm:$0xff] }
 0x13b   : > { %1325 = vmatprep.subr.mxu0 %v1240_v25 }
 0x13c   : > { %1326 = vmatpush2.msra.mxu0 %v1239_v29 }
 0x13d   : > { %1327 = vmatprep.subr.mxu0 %v1238_v34 }
 0x155   : > { %v609_v36 = vpop.f32.mrf.mxu0 }
 0x156   : > { %v610_v43 = vadd.f32 %v609_v36, %v2884_v35  ;;  %v1237_v36 = vld [vmem:[#allocation9 + $0x140] sm:$0xff] }
 0x157   : > { %v611_v37 = vpop.f32.mrf.mxu0  ;;  %1328 = vmatpush2.msra.mxu0 %v1237_v36 }
 0x158   : > { %v612_v41 = vadd.f32 %v611_v37, %v2881_v32  ;;  %1329 = vmatprep.subr.mxu0 %v1236_v38 }
 0x159   : > { %v615_v44 = vpop.f32.mrf.mxu0  ;;  %1330 = vmatpush2.msra.mxu0 %v1235_v40 }
 0x15a   : > { %940 = vmatprep.mubr.f32.mxu1 %v612_v41  ;;  %v616_v51 = vadd.f32 %v615_v44, %v2884_v35  ;;  %v1233_v44 = vld [vmem:[#allocation9 + $0x120] sm:$0xff] }
 0x15b   : > { %v617_v47 = vpop.f32.mrf.mxu0  ;;  %941 = vmatmul.mubr.f32.vlgmr.msra.gmra.mxu1 %v610_v43  ;;  %v1234_v43 = vld [vmem:[#allocation9 + $0x128] sm:$0xff] }
 0x15c   : > { %v618_v49 = vadd.f32 %v617_v47, %v2881_v32  ;;  %1331 = vmatprep.subr.mxu0 %v1234_v43 }
 0x15d   : > { %v621_v52 = vpop.f32.mrf.mxu0  ;;  %1332 = vmatpush2.msra.mxu0 %v1233_v44 }
 0x15e   : > { %946 = vmatprep.mubr.f32.mxu1 %v618_v49  ;;  %v622_v59 = vadd.f32 %v621_v52, %v2884_v35  ;;  %1333 = vmatprep.subr.mxu0 %v1232_v21 }
 0x15f   : > { %v623_v55 = vpop.f32.mrf.mxu0  ;;  %947 = vmatmul.mubr.f32.gmra.mxu1 %v616_v51  ;;  %1334 = vmatpush2.msra.mxu0 %v1231_v22  ;;  %v1625_v22 = vld [vmem:[#allocation11 + $0xf8] sm:$0xff] }
 0x160   : > { %v624_v57 = vadd.f32 %v623_v55, %v2881_v32  ;;  %1670 = vmatprep.subr.mxu1 %v1625_v22 }
 0x161   : > { %v627_v60 = vpop.f32.mrf.mxu0 }
 0x162   : > { %952 = vmatprep.mubr.f32.mxu1 %v624_v57  ;;  %v628_v4 = vadd.f32 %v627_v60, %v2884_v35 }
 0x163   : > { %v629_v63 = vpop.f32.mrf.mxu0  ;;  %953 = vmatmul.mubr.f32.gmra.mxu1 %v622_v59 }
 0x164   : > { %v630_v2 = vadd.f32 %v629_v63, %v2881_v32 }
 0x165   : > { %v633_v5 = vpop.f32.mrf.mxu0 }
 0x166   : > { %958 = vmatprep.mubr.f32.mxu1 %v630_v2  ;;  %v634_v12 = vadd.f32 %v633_v5, %v2884_v35 }
 0x167   : > { %v635_v8 = vpop.f32.mrf.mxu0  ;;  %959 = vmatmul.mubr.f32.gmra.mxu1 %v628_v4 }
 0x168   : > { %v636_v10 = vadd.f32 %v635_v8, %v2881_v32 }
 0x169   : > { %v639_v1 = vpop.f32.mrf.mxu0 }
 0x16a   : > { %964 = vmatprep.mubr.f32.mxu1 %v636_v10  ;;  %v640_v19 = vadd.f32 %v639_v1, %v2884_v35 }
 0x16b   : > { %v641_v15 = vpop.f32.mrf.mxu0  ;;  %965 = vmatmul.mubr.f32.gmra.mxu1 %v634_v12 }
 0x16c   : > { %v642_v17 = vadd.f32 %v641_v15, %v2881_v32 }
 0x16d   : > { %v645_v20 = vpop.f32.mrf.mxu0 }
 0x16e   : > { %970 = vmatprep.mubr.f32.mxu1 %v642_v17  ;;  %v646_v31 = vadd.f32 %v645_v20, %v2884_v35 }
 0x16f   : > { %v647_v24 = vpop.f32.mrf.mxu0  ;;  %971 = vmatmul.mubr.f32.gmra.mxu1 %v640_v19 }
 0x170   : > { %v648_v28 = vadd.f32 %v647_v24, %v2881_v32 }
 0x171   : > { %v651_v33 = vpop.f32.mrf.mxu0 }
 0x172   : > { %976 = vmatprep.mubr.f32.mxu1 %v648_v28  ;;  %v652_v41 = vadd.f32 %v651_v33, %v2884_v35  ;;  %v1230_v28 = vld [vmem:[#allocation9 + $0x108] sm:$0xff]  ;;  %v1229_v33 = vld [vmem:[#allocation9 + $0x100] sm:$0xff] }
 0x173   : > { %v653_v37 = vpop.f32.mrf.mxu0  ;;  %977 = vmatmul.mubr.f32.gmra.mxu1 %v646_v31  ;;  %1335 = vmatprep.subr.mxu0 %v1230_v28  ;;  %v1622_v28 = vld [vmem:[#allocation11 + $0xe0] sm:$0xff] }
 0x174   : > { %v654_v39 = vadd.f32 %v653_v37, %v2881_v32  ;;  %1336 = vmatpush2.msra.mxu0 %v1229_v33  ;;  %v1619_v33 = vld [vmem:[#allocation11 + $0xc8] sm:$0xff] }
 0x175   : > { %v657_v42 = vpop.f32.mrf.mxu0 }
 0x176   : > { %982 = vmatprep.mubr.f32.mxu1 %v654_v39  ;;  %v658_v47 = vadd.f32 %v657_v42, %v2884_v35 }
 0x177   : > { %v659_v45 = vpop.f32.mrf.mxu0  ;;  %983 = vmatmul.mubr.f32.gmra.mxu1 %v652_v41 }
 0x178   : > { %v660_v46 = vadd.f32 %v659_v45, %v2881_v32 }
 0x179   : > { %v663_v48 = vpop.f32.mrf.mxu0 }
 0x17a   : > { %988 = vmatprep.mubr.f32.mxu1 %v660_v46  ;;  %v664_v51 = vadd.f32 %v663_v48, %v2884_v35 }
 0x17b   : > { %v665_v49 = vpop.f32.mrf.mxu0  ;;  %989 = vmatmul.mubr.f32.gmra.mxu1 %v658_v47 }
 0x17c   : > { %v666_v50 = vadd.f32 %v665_v49, %v2881_v32 }
 0x17d   : > { %v669_v52 = vpop.f32.mrf.mxu0 }
 0x17e   : > { %994 = vmatprep.mubr.f32.mxu1 %v666_v50  ;;  %v670_v55 = vadd.f32 %v669_v52, %v2884_v35 }
 0x17f   : > { %v671_v53 = vpop.f32.mrf.mxu0  ;;  %995 = vmatmul.mubr.f32.gmra.mxu1 %v664_v51 }
 0x180   : > { %v672_v54 = vadd.f32 %v671_v53, %v2881_v32 }
 0x181   : > { %v675_v56 = vpop.f32.mrf.mxu0 }
 0x182   : > { %1000 = vmatprep.mubr.f32.mxu1 %v672_v54  ;;  %v676_v59 = vadd.f32 %v675_v56, %v2884_v35 }
 0x183   : > { %v677_v57 = vpop.f32.mrf.mxu0  ;;  %1001 = vmatmul.mubr.f32.gmra.mxu1 %v670_v55 }
 0x184   : > { %v678_v58 = vadd.f32 %v677_v57, %v2881_v32 }
 0x185   : > { %v681_v60 = vpop.f32.mrf.mxu0 }
 0x186   : > { %1006 = vmatprep.mubr.f32.mxu1 %v678_v58  ;;  %v682_v63 = vadd.f32 %v681_v60, %v2884_v35 }
 0x187   : > { %v683_v61 = vpop.f32.mrf.mxu0  ;;  %1007 = vmatmul.mubr.f32.gmra.mxu1 %v676_v59 }
 0x188   : > { %v684_v62 = vadd.f32 %v683_v61, %v2881_v32 }
 0x189   : > { %v687_v0 = vpop.f32.mrf.mxu0 }
 0x18a   : > { %1012 = vmatprep.mubr.f32.mxu1 %v684_v62  ;;  %v688_v4 = vadd.f32 %v687_v0, %v2884_v35 }
 0x18b   : > { %v689_v2 = vpop.f32.mrf.mxu0  ;;  %1013 = vmatmul.mubr.f32.gmra.mxu1 %v682_v63 }
 0x18c   : > { %v690_v3 = vadd.f32 %v689_v2, %v2881_v32 }
 0x18d   : > { %v693_v5 = vpop.f32.mrf.mxu0 }
 0x18e   : > { %1018 = vmatprep.mubr.f32.mxu1 %v690_v3  ;;  %v694_v8 = vadd.f32 %v693_v5, %v2884_v35 }
 0x18f   : > { %v695_v6 = vpop.f32.mrf.mxu0  ;;  %1019 = vmatmul.mubr.f32.gmra.mxu1 %v688_v4 }
 0x190   : > { %v696_v7 = vadd.f32 %v695_v6, %v2881_v32 }
 0x191   : > { %v699_v9 = vpop.f32.mrf.mxu0 }
 0x192   : > { %1024 = vmatprep.mubr.f32.mxu1 %v696_v7  ;;  %v700_v12 = vadd.f32 %v699_v9, %v2884_v35 }
 0x193   : > { %v701_v10 = vpop.f32.mrf.mxu0  ;;  %1025 = vmatmul.mubr.f32.gmra.mxu1 %v694_v8 }
 0x194   : > { %v702_v11 = vadd.f32 %v701_v10, %v2881_v32 }
 0x195   : > { %v705_v1 = vpop.f32.mrf.mxu0 }
 0x196   : > { %1030 = vmatprep.mubr.f32.mxu1 %v702_v11  ;;  %v706_v15 = vadd.f32 %v705_v1, %v2884_v35 }
 0x197   : > { %v707_v13 = vpop.f32.mrf.mxu0  ;;  %1031 = vmatmul.mubr.f32.gmra.mxu1 %v700_v12 }
 0x198   : > { %v708_v14 = vadd.f32 %v707_v13, %v2881_v32 }
 0x199   : > { %v711_v16 = vpop.f32.mrf.mxu0 }
 0x19a   : > { %1036 = vmatprep.mubr.f32.mxu1 %v708_v14  ;;  %v712_v19 = vadd.f32 %v711_v16, %v2884_v35 }
 0x19b   : > { %v713_v17 = vpop.f32.mrf.mxu0  ;;  %1037 = vmatmul.mubr.f32.gmra.mxu1 %v706_v15 }
 0x19c   : > { %v714_v18 = vadd.f32 %v713_v17, %v2881_v32 }
 0x19d   : > { %v717_v20 = vpop.f32.mrf.mxu0 }
 0x19e   : > { %1042 = vmatprep.mubr.f32.mxu1 %v714_v18  ;;  %v718_v29 = vadd.f32 %v717_v20, %v2884_v35 }
 0x19f   : > { %v719_v24 = vpop.f32.mrf.mxu0  ;;  %1043 = vmatmul.mubr.f32.gmra.mxu1 %v712_v19 }
 0x1a0   : > { %v720_v25 = vadd.f32 %v719_v24, %v2881_v32  ;;  %v1624_v24 = vld [vmem:[#allocation11 + $0xf0] sm:$0xff] }
 0x1a1   : > { %v723_v31 = vpop.f32.mrf.mxu0  ;;  %1671 = vmatpush1.msra.mxu1 %v1624_v24 }
 0x1a2   : > { %1048 = vmatprep.mubr.f32.mxu1 %v720_v25  ;;  %v724_v37 = vadd.f32 %v723_v31, %v2884_v35  ;;  %v1623_v25 = vld [vmem:[#allocation11 + $0xe8] sm:$0xff]  ;;  %v1620_v31 = vld [vmem:[#allocation11 + $0xd0] sm:$0xff] }
 0x1a3   : > { %v725_v34 = vpop.f32.mrf.mxu0  ;;  %1049 = vmatmul.mubr.f32.gmra.mxu1 %v718_v29  ;;  %1672 = vmatprep.subr.mxu1 %v1623_v25  ;;  %v1621_v29 = vld [vmem:[#allocation11 + $0xd8] sm:$0xff]  ;;  %v1651_v25 = vld [vmem:[#allocation11 + $0x1c8] sm:$0xff] }
 0x1a4   : > { %v726_v36 = vadd.f32 %v725_v34, %v2881_v32  ;;  %1673 = vmatpush1.msra.mxu1 %v1622_v28  ;;  %v1618_v34 = vld [vmem:[#allocation11 + $0xc0] sm:$0xff] }
 0x1a5   : > { %v729_v38 = vpop.f32.mrf.mxu0  ;;  %1674 = vmatprep.subr.mxu1 %v1621_v29  ;;  %v1650_v29 = vld [vmem:[#allocation11 + $0x1c0] sm:$0xff] }
 0x1a6   : > { %1054 = vmatprep.mubr.f32.mxu1 %v726_v36  ;;  %v730_v41 = vadd.f32 %v729_v38, %v2884_v35  ;;  %1675 = vmatpush1.msra.mxu1 %v1620_v31  ;;  %v1615_v36 = vld [vmem:[#allocation11 + $0xa8] sm:$0xff]  ;;  %v1613_v38 = vld [vmem:[#allocation11 + $0x98] sm:$0xff] }
 0x1a7   : > { %v731_v39 = vpop.f32.mrf.mxu0  ;;  %1055 = vmatmul.mubr.f32.gmra.mxu1 %v724_v37  ;;  %1676 = vmatprep.subr.mxu1 %v1619_v33  ;;  %v1614_v37 = vld [vmem:[#allocation11 + $0xa0] sm:$0xff]  ;;  %v1649_v33 = vld [vmem:[#allocation11 + $0x1b8] sm:$0xff] }
 0x1a8   : > { %v732_v40 = vadd.f32 %v731_v39, %v2881_v32  ;;  %1677 = vmatpush1.msra.mxu1 %v1618_v34  ;;  %v1612_v39 = vld [vmem:[#allocation11 + $0x90] sm:$0xff] }
 0x1a9   : > { %v735_v42 = vpop.f32.mrf.mxu0 }
 0x1aa   : > { %1060 = vmatprep.mubr.f32.mxu1 %v732_v40  ;;  %v736_v45 = vadd.f32 %v735_v42, %v2884_v35  ;;  %v1611_v40 = vld [vmem:[#allocation11 + $0x88] sm:$0xff]  ;;  %v1609_v42 = vld [vmem:[#allocation11 + $0x78] sm:$0xff] }
 0x1ab   : > { %v737_v43 = vpop.f32.mrf.mxu0  ;;  %1061 = vmatmul.mubr.f32.gmra.mxu1 %v730_v41  ;;  %v1610_v41 = vld [vmem:[#allocation11 + $0x80] sm:$0xff] }
 0x1ac   : > { %v738_v44 = vadd.f32 %v737_v43, %v2881_v32  ;;  %v1608_v43 = vld [vmem:[#allocation11 + $0x70] sm:$0xff] }
 0x1ad   : > { %v741_v46 = vpop.f32.mrf.mxu0 }
 0x1ae   : > { %1066 = vmatprep.mubr.f32.mxu1 %v738_v44  ;;  %v742_v49 = vadd.f32 %v741_v46, %v2884_v35  ;;  %v1607_v44 = vld [vmem:[#allocation11 + $0x68] sm:$0xff]  ;;  %v864_v46 = vld [vmem:[%s3347_s4] sm:$0x3] }
 0x1af   : > { %v743_v47 = vpop.f32.mrf.mxu0  ;;  %1067 = vmatmul.mubr.f32.gmra.mxu1 %v736_v45  ;;  %v1606_v45 = vld [vmem:[#allocation11 + $0x60] sm:$0xff] }
 0x1b0   : > { %v744_v48 = vadd.f32 %v743_v47, %v2881_v32  ;;  %v1605_v47 = vld [vmem:[#allocation11 + $0x58] sm:$0xff] }
 0x1b1   : > { %v747_v50 = vpop.f32.mrf.mxu0 }
 0x1b2   : > { %1072 = vmatprep.mubr.f32.mxu1 %v744_v48  ;;  %v748_v53 = vadd.f32 %v747_v50, %v2884_v35  ;;  %v1604_v48 = vld [vmem:[#allocation11 + $0x50] sm:$0xff]  ;;  %v2957_v50 = vrot.slane %v864_v46, %v2872_v27 }
 0x1b3   : > { %v749_v51 = vpop.f32.mrf.mxu0  ;;  %1073 = vmatmul.mubr.f32.gmra.mxu1 %v742_v49  ;;  %v2954_v49 = vrot.slane %v864_v46, %v2875_v30 }
 0x1b4   : > { %v750_v52 = vadd.f32 %v749_v51, %v2881_v32  ;;  %v1603_v51 = vld [vmem:[#allocation11 + $0x48] sm:$0xff] }
 0x1b5   : > { %v753_v54 = vpop.f32.mrf.mxu0 }
 0x1b6   : > { %1078 = vmatprep.mubr.f32.mxu1 %v750_v52  ;;  %v754_v57 = vadd.f32 %v753_v54, %v2884_v35  ;;  %v1602_v52 = vld [vmem:[#allocation11 + $0x40] sm:$0xff]  ;;  %v1601_v54 = vld [vmem:[#allocation11 + $0x38] sm:$0xff] }
 0x1b7   : > { %v755_v55 = vpop.f32.mrf.mxu0  ;;  %1079 = vmatmul.mubr.f32.gmra.mxu1 %v748_v53 }
 0x1b8   : > { %v756_v56 = vadd.f32 %v755_v55, %v2881_v32  ;;  %v1600_v55 = vld [vmem:[#allocation11 + $0x30] sm:$0xff] }
 0x1b9   : > { %v759_v58 = vpop.f32.mrf.mxu0 }
 0x1ba   : > { %1084 = vmatprep.mubr.f32.mxu1 %v756_v56  ;;  %v760_v61 = vadd.f32 %v759_v58, %v2884_v35 }
 0x1bb   : > { %v761_v59 = vpop.f32.mrf.mxu0  ;;  %1085 = vmatmul.mubr.f32.gmra.mxu1 %v754_v57 }
 0x1bc   : > { %v762_v60 = vadd.f32 %v761_v59, %v2881_v32 }
 0x1bd   : > { %v765_v62 = vpop.f32.mrf.mxu0 }
 0x1be   : > { %1090 = vmatprep.mubr.f32.mxu1 %v762_v60  ;;  %v766_v2 = vadd.f32 %v765_v62, %v2884_v35  ;;  %v1599_v60 = vld [vmem:[#allocation11 + $0x28] sm:$0xff]  ;;  %v1597_v62 = vld [vmem:[#allocation11 + $0x18] sm:$0xff] }
 0x1bf   : > { %v767_v63 = vpop.f32.mrf.mxu0  ;;  %1091 = vmatmul.mubr.f32.gmra.mxu1 %v760_v61  ;;  %v1598_v61 = vld [vmem:[#allocation11 + $0x20] sm:$0xff] }
 0x1c0   : > { %v768_v0 = vadd.f32 %v767_v63, %v2881_v32 }
 0x1c1   : > { %v771_v3 = vpop.f32.mrf.mxu0 }
 0x1c2   : > { %1096 = vmatprep.mubr.f32.mxu1 %v768_v0  ;;  %v772_v6 = vadd.f32 %v771_v3, %v2884_v35  ;;  %v1596_v0 = vld [vmem:[#allocation11 + $0x10] sm:$0xff] }
 0x1c3   : > { %v773_v4 = vpop.f32.mrf.mxu0  ;;  %1097 = vmatmul.mubr.f32.gmra.mxu1 %v766_v2 }
 0x1c4   : > { %v774_v5 = vadd.f32 %v773_v4, %v2881_v32 }
 0x1c5   : > { %v777_v7 = vpop.f32.mrf.mxu0 }
 0x1c6   : > { %1102 = vmatprep.mubr.f32.mxu1 %v774_v5  ;;  %v778_v10 = vadd.f32 %v777_v7, %v2884_v35  ;;  %v1595_v5 = vld [vmem:[#allocation11 + $0x8] sm:$0xff]  ;;  %v1594_v7 = vld [vmem:[#allocation11] sm:$0xff] }
 0x1c7   : > { %v779_v8 = vpop.f32.mrf.mxu0  ;;  %1103 = vmatmul.mubr.f32.gmra.mxu1 %v772_v6 }
 0x1c8   : > { %v780_v9 = vadd.f32 %v779_v8, %v2881_v32 }
 0x1c9   : > { %v783_v11 = vpop.f32.mrf.mxu0 }
 0x1ca   : > { %1108 = vmatprep.mubr.f32.mxu1 %v780_v9  ;;  %v784_v13 = vadd.f32 %v783_v11, %v2884_v35  ;;  %v1657_v9 = vld [vmem:[#allocation11 + $0x1f8] sm:$0xff]  ;;  %v1656_v11 = vld [vmem:[#allocation11 + $0x1f0] sm:$0xff] }
 0x1cb   : > { %v785_v12 = vpop.f32.mrf.mxu0  ;;  %1109 = vmatmul.mubr.f32.gmra.mxu1 %v778_v10 }
 0x1cc   : > { %v786_v1 = vadd.f32 %v785_v12, %v2881_v32 }
 0x1cd   : > { %v789_v14 = vpop.f32.mrf.mxu0 }
 0x1ce   : > { %1114 = vmatprep.mubr.f32.mxu1 %v786_v1  ;;  %v790_v17 = vadd.f32 %v789_v14, %v2884_v35  ;;  %v1655_v14 = vld [vmem:[#allocation11 + $0x1e8] sm:$0xff] }
 0x1cf   : > { %v791_v15 = vpop.f32.mrf.mxu0  ;;  %1115 = vmatmul.mubr.f32.gmra.mxu1 %v784_v13 }
 0x1d0   : > { %v792_v16 = vadd.f32 %v791_v15, %v2881_v32 }
 0x1d1   : > { %v795_v18 = vpop.f32.mrf.mxu0 }
 0x1d2   : > { %1120 = vmatprep.mubr.f32.mxu1 %v792_v16  ;;  %v796_v21 = vadd.f32 %v795_v18, %v2884_v35  ;;  %v1616_v35 = vld [vmem:[#allocation11 + $0xb0] sm:$0xff]  ;;  %v1654_v16 = vld [vmem:[#allocation11 + $0x1e0] sm:$0xff]  ;;  %v1653_v18 = vld [vmem:[#allocation11 + $0x1d8] sm:$0xff] }
 0x1d3   : > { %v797_v19 = vpop.f32.mrf.mxu0  ;;  %1121 = vmatmul.mubr.f32.gmra.mxu1 %v790_v17 }
 0x1d4   : > { %v798_v20 = vadd.f32 %v797_v19, %v2881_v32  ;;  %v1617_v32 = vld [vmem:[#allocation11 + $0xb8] sm:$0xff] }
 0x1d5   : > { %1678 = vmatprep.subr.mxu1 %v1617_v32  ;;  %v1648_v32 = vld [vmem:[#allocation11 + $0x1b0] sm:$0xff] }
 0x1d6   : > { %1126 = vmatprep.mubr.f32.mxu1 %v798_v20  ;;  %1679 = vmatpush1.msra.mxu1 %v1616_v35  ;;  %v1652_v20 = vld [vmem:[#allocation11 + $0x1d0] sm:$0xff] }
 0x1d7   : > { %1127 = vmatmul.mubr.f32.gmra.mxu1 %v796_v21  ;;  %1680 = vmatprep.subr.mxu1 %v1615_v36 }
 0x1d8   : > { %1681 = vmatpush1.msra.mxu1 %v1614_v37 }
 0x1d9   : > { %1682 = vmatprep.subr.mxu1 %v1613_v38  ;;  %v1647_v38 = vld [vmem:[#allocation11 + $0x1a8] sm:$0xff] }
 0x1da   : > { %1683 = vmatpush1.msra.mxu1 %v1612_v39 }
 0x1db   : > { %1684 = vmatprep.subr.mxu1 %v1611_v40  ;;  %v1646_v40 = vld [vmem:[#allocation11 + $0x1a0] sm:$0xff] }
 0x1dc   : > { %1685 = vmatpush1.msra.mxu1 %v1610_v41 }
 0x1dd   : > { %1686 = vmatprep.subr.mxu1 %v1609_v42  ;;  %v1645_v42 = vld [vmem:[#allocation11 + $0x198] sm:$0xff] }
 0x1de   : > { %1687 = vmatpush1.msra.mxu1 %v1608_v43 }
 0x1df   : > { %1688 = vmatprep.subr.mxu1 %v1607_v44  ;;  %v1644_v44 = vld [vmem:[#allocation11 + $0x190] sm:$0xff] }
 0x1e0   : > { %1689 = vmatpush1.msra.mxu1 %v1606_v45 }
 0x1e1   : > { %1690 = vmatprep.subr.mxu1 %v1605_v47 }
 0x1e2   : > { %1691 = vmatpush1.msra.mxu1 %v1604_v48  ;;  %v1643_v48 = vld [vmem:[#allocation11 + $0x188] sm:$0xff] }
 0x1e3   : > { %1692 = vmatprep.subr.mxu1 %v1603_v51 }
 0x1e4   : > { %1693 = vmatpush1.msra.mxu1 %v1602_v52  ;;  %v1642_v52 = vld [vmem:[#allocation11 + $0x180] sm:$0xff] }
 0x1e5   : > { %1694 = vmatprep.subr.mxu1 %v1601_v54  ;;  %v1641_v54 = vld [vmem:[#allocation11 + $0x178] sm:$0xff] }
 0x1e6   : > { %1695 = vmatpush1.msra.mxu1 %v1600_v55 }
 0x1e7   : > { %1696 = vmatprep.subr.mxu1 %v1599_v60  ;;  %v1639_v60 = vld [vmem:[#allocation11 + $0x168] sm:$0xff] }
 0x1e8   : > { %1697 = vmatpush1.msra.mxu1 %v1598_v61 }
 0x1e9   : > { %1698 = vmatprep.subr.mxu1 %v1597_v62  ;;  %v1638_v62 = vld [vmem:[#allocation11 + $0x160] sm:$0xff] }
 0x1ea   : > { %1699 = vmatpush1.msra.mxu1 %v1596_v0  ;;  %v1637_v0 = vld [vmem:[#allocation11 + $0x158] sm:$0xff] }
 0x1eb   : > { %1700 = vmatprep.subr.mxu1 %v1595_v5 }
 0x1ec   : > { %1701 = vmatpush1.msra.mxu1 %v1594_v7  ;;  %v1635_v7 = vld [vmem:[#allocation11 + $0x148] sm:$0xff] }
 0x1ed   : > { %1702 = vmatprep.subr.mxu1 %v1657_v9  ;;  %v1634_v9 = vld [vmem:[#allocation11 + $0x140] sm:$0xff] }
 0x1ee   : > { %1703 = vmatpush2.msra.mxu1 %v1656_v11  ;;  %v1633_v11 = vld [vmem:[#allocation11 + $0x138] sm:$0xff] }
 0x1ef   : > { %1704 = vmatprep.subr.mxu1 %v1655_v14 }
 0x1f0   : > { %1705 = vmatpush2.msra.mxu1 %v1654_v16  ;;  %v1631_v16 = vld [vmem:[#allocation11 + $0x128] sm:$0xff] }
 0x1f1   : > { %1706 = vmatprep.subr.mxu1 %v1653_v18  ;;  %v1630_v18 = vld [vmem:[#allocation11 + $0x120] sm:$0xff] }
 0x1f2   : > { %1707 = vmatpush2.msra.mxu1 %v1652_v20 }
 0x1f3   : > { %1708 = vmatprep.subr.mxu1 %v1651_v25 }
 0x1f4   : > { %1709 = vmatpush2.msra.mxu1 %v1650_v29 }
 0x1f5   : > { %1710 = vmatprep.subr.mxu1 %v1649_v33 }
 0x1f6   : > { %1711 = vmatpush2.msra.mxu1 %v1648_v32 }
 0x1f7   : > { %1712 = vmatprep.subr.mxu1 %v1647_v38 }
 0x1f8   : > { %1713 = vmatpush2.msra.mxu1 %v1646_v40 }
 0x1f9   : > { %1714 = vmatprep.subr.mxu1 %v1645_v42 }
 0x1fa   : > { %1715 = vmatpush2.msra.mxu1 %v1644_v44 }
 0x1fb   : > { %1716 = vmatprep.subr.mxu1 %v1643_v48 }
 0x1fc   : > { %1717 = vmatpush2.msra.mxu1 %v1642_v52 }
 0x1fd   : > { %1718 = vmatprep.subr.mxu1 %v1641_v54 }
 0x21b   : > { %v942_v53 = vpop.f32.mrf.mxu1 }
 0x21c   : > { %v943_v56 = vadd.f32 %v942_v53, %v2954_v49 }
 0x21d   : > { %v944_v57 = vpop.f32.mrf.mxu1 }
 0x21e   : > { %v945_v58 = vadd.f32 %v944_v57, %v2957_v50  ;;  %v1133_v2 = vmax.f32 %v943_v56, 0.0  ;;  %v1640_v56 = vld [vmem:[#allocation11 + $0x170] sm:$0xff] }
 0x21f   : > { %v948_v59 = vpop.f32.mrf.mxu1  ;;  %1719 = vmatpush2.msra.mxu1 %v1640_v56 }
 0x220   : > { %v1134_v63 = vmax.f32 %v945_v58, 0.0  ;;  %v949_v3 = vadd.f32 %v948_v59, %v2954_v49  ;;  %1720 = vmatprep.subr.mxu1 %v1639_v60 }
 0x221   : > { %v950_v4 = vpop.f32.mrf.mxu1  ;;  %1721 = vmatpush2.msra.mxu1 %v1638_v62 }
 0x222   : > { %v951_v6 = vadd.f32 %v950_v4, %v2957_v50  ;;  %1337 = vmatprep.mubr.f32.mxu0 %v1134_v63  ;;  %v1135_v12 = vmax.f32 %v949_v3, 0.0  ;;  %v1636_v3 = vld [vmem:[#allocation11 + $0x150] sm:$0xff]  ;;  %1722 = vmatprep.subr.mxu1 %v1637_v0 }
 0x223   : > { %v954_v8 = vpop.f32.mrf.mxu1  ;;  %1338 = vmatmul.mubr.f32.vlgmr.msra.gmra.mxu0 %v1133_v2  ;;  %1723 = vmatpush2.msra.mxu1 %v1636_v3 }
 0x224   : > { %v1136_v10 = vmax.f32 %v951_v6, 0.0  ;;  %v955_v1 = vadd.f32 %v954_v8, %v2954_v49  ;;  %1724 = vmatprep.subr.mxu1 %v1635_v7 }
 0x225   : > { %v956_v13 = vpop.f32.mrf.mxu1  ;;  %1725 = vmatpush2.msra.mxu1 %v1634_v9 }
 0x226   : > { %v957_v15 = vadd.f32 %v956_v13, %v2957_v50  ;;  %1343 = vmatprep.mubr.f32.mxu0 %v1136_v10  ;;  %v1137_v21 = vmax.f32 %v955_v1, 0.0  ;;  %v1632_v1 = vld [vmem:[#allocation11 + $0x130] sm:$0xff]  ;;  %1726 = vmatprep.subr.mxu1 %v1633_v11 }
 0x227   : > { %v960_v17 = vpop.f32.mrf.mxu1  ;;  %1344 = vmatmul.mubr.f32.gmra.mxu0 %v1135_v12  ;;  %1727 = vmatpush2.msra.mxu1 %v1632_v1 }
 0x228   : > { %v1138_v19 = vmax.f32 %v957_v15, 0.0  ;;  %v961_v22 = vadd.f32 %v960_v17, %v2954_v49  ;;  %1728 = vmatprep.subr.mxu1 %v1631_v16 }
 0x229   : > { %v962_v24 = vpop.f32.mrf.mxu1  ;;  %1729 = vmatpush2.msra.mxu1 %v1630_v18 }
 0x22a   : > { %v963_v28 = vadd.f32 %v962_v24, %v2957_v50  ;;  %1349 = vmatprep.mubr.f32.mxu0 %v1138_v19  ;;  %v1139_v35 = vmax.f32 %v961_v22, 0.0 }
 0x22b   : > { %v966_v31 = vpop.f32.mrf.mxu1  ;;  %1350 = vmatmul.mubr.f32.gmra.mxu0 %v1137_v21 }
 0x22c   : > { %v1140_v34 = vmax.f32 %v963_v28, 0.0  ;;  %v967_v36 = vadd.f32 %v966_v31, %v2954_v49 }
 0x22d   : > { %v968_v37 = vpop.f32.mrf.mxu1 }
 0x22e   : > { %v969_v39 = vadd.f32 %v968_v37, %v2957_v50  ;;  %1355 = vmatprep.mubr.f32.mxu0 %v1140_v34  ;;  %v1141_v45 = vmax.f32 %v967_v36, 0.0 }
 0x22f   : > { %v972_v41 = vpop.f32.mrf.mxu1  ;;  %1356 = vmatmul.mubr.f32.gmra.mxu0 %v1139_v35 }
 0x230   : > { %v1142_v43 = vmax.f32 %v969_v39, 0.0  ;;  %v973_v46 = vadd.f32 %v972_v41, %v2954_v49 }
 0x231   : > { %v974_v47 = vpop.f32.mrf.mxu1 }
 0x232   : > { %v975_v51 = vadd.f32 %v974_v47, %v2957_v50  ;;  %1361 = vmatprep.mubr.f32.mxu0 %v1142_v43  ;;  %v1143_v57 = vmax.f32 %v973_v46, 0.0 }
 0x233   : > { %v978_v53 = vpop.f32.mrf.mxu1  ;;  %1362 = vmatmul.mubr.f32.gmra.mxu0 %v1141_v45 }
 0x234   : > { %v1144_v55 = vmax.f32 %v975_v51, 0.0  ;;  %v979_v58 = vadd.f32 %v978_v53, %v2954_v49 }
 0x235   : > { %v980_v59 = vpop.f32.mrf.mxu1 }
 0x236   : > { %v981_v61 = vadd.f32 %v980_v59, %v2957_v50  ;;  %1367 = vmatprep.mubr.f32.mxu0 %v1144_v55  ;;  %v1145_v4 = vmax.f32 %v979_v58, 0.0 }
 0x237   : > { %v984_v63 = vpop.f32.mrf.mxu1  ;;  %1368 = vmatmul.mubr.f32.gmra.mxu0 %v1143_v57 }
 0x238   : > { %v1146_v2 = vmax.f32 %v981_v61, 0.0  ;;  %v985_v5 = vadd.f32 %v984_v63, %v2954_v49 }
 0x239   : > { %v986_v6 = vpop.f32.mrf.mxu1 }
 0x23a   : > { %v987_v8 = vadd.f32 %v986_v6, %v2957_v50  ;;  %1373 = vmatprep.mubr.f32.mxu0 %v1146_v2  ;;  %v1147_v13 = vmax.f32 %v985_v5, 0.0 }
 0x23b   : > { %v990_v10 = vpop.f32.mrf.mxu1  ;;  %1374 = vmatmul.mubr.f32.gmra.mxu0 %v1145_v4 }
 0x23c   : > { %v1148_v12 = vmax.f32 %v987_v8, 0.0  ;;  %v991_v14 = vadd.f32 %v990_v10, %v2954_v49 }
 0x23d   : > { %v992_v15 = vpop.f32.mrf.mxu1 }
 0x23e   : > { %v993_v17 = vadd.f32 %v992_v15, %v2957_v50  ;;  %1379 = vmatprep.mubr.f32.mxu0 %v1148_v12  ;;  %v1149_v21 = vmax.f32 %v991_v14, 0.0 }
 0x23f   : > { %v996_v19 = vpop.f32.mrf.mxu1  ;;  %1380 = vmatmul.mubr.f32.gmra.mxu0 %v1147_v13 }
 0x240   : > { %v1150_v20 = vmax.f32 %v993_v17, 0.0  ;;  %v997_v22 = vadd.f32 %v996_v19, %v2954_v49 }
 0x241   : > { %v998_v24 = vpop.f32.mrf.mxu1 }
 0x242   : > { %v999_v25 = vadd.f32 %v998_v24, %v2957_v50  ;;  %1385 = vmatprep.mubr.f32.mxu0 %v1150_v20  ;;  %v1151_v31 = vmax.f32 %v997_v22, 0.0  ;;  %v1628_v22 = vld [vmem:[#allocation11 + $0x110] sm:$0xff] }
 0x243   : > { %v1002_v28 = vpop.f32.mrf.mxu1  ;;  %1386 = vmatmul.mubr.f32.gmra.mxu0 %v1149_v21  ;;  %v1629_v21 = vld [vmem:[#allocation11 + $0x118] sm:$0xff] }
 0x244   : > { %v1152_v29 = vmax.f32 %v999_v25, 0.0  ;;  %v1003_v33 = vadd.f32 %v1002_v28, %v2954_v49  ;;  %1730 = vmatprep.subr.mxu1 %v1629_v21  ;;  %v1627_v28 = vld [vmem:[#allocation11 + $0x108] sm:$0xff] }
 0x245   : > { %v1004_v34 = vpop.f32.mrf.mxu1  ;;  %1731 = vmatpush2.msra.mxu1 %v1628_v22 }
 0x246   : > { %v1005_v32 = vadd.f32 %v1004_v34, %v2957_v50  ;;  %1391 = vmatprep.mubr.f32.mxu0 %v1152_v29  ;;  %v1153_v37 = vmax.f32 %v1003_v33, 0.0  ;;  %1732 = vmatprep.subr.mxu1 %v1627_v28  ;;  %v1626_v34 = vld [vmem:[#allocation11 + $0x100] sm:$0xff] }
 0x247   : > { %v1008_v35 = vpop.f32.mrf.mxu1  ;;  %1392 = vmatmul.mubr.f32.gmra.mxu0 %v1151_v31  ;;  %1733 = vmatpush2.msra.mxu1 %v1626_v34 }
 0x248   : > { %v1154_v36 = vmax.f32 %v1005_v32, 0.0  ;;  %v1009_v38 = vadd.f32 %v1008_v35, %v2954_v49 }
 0x249   : > { %v1010_v39 = vpop.f32.mrf.mxu1 }
 0x24a   : > { %v1011_v40 = vadd.f32 %v1010_v39, %v2957_v50  ;;  %1397 = vmatprep.mubr.f32.mxu0 %v1154_v36  ;;  %v1155_v43 = vmax.f32 %v1009_v38, 0.0 }
 0x24b   : > { %v1014_v41 = vpop.f32.mrf.mxu1  ;;  %1398 = vmatmul.mubr.f32.gmra.mxu0 %v1153_v37 }
 0x24c   : > { %v1156_v42 = vmax.f32 %v1011_v40, 0.0  ;;  %v1015_v44 = vadd.f32 %v1014_v41, %v2954_v49 }
 0x24d   : > { %v1016_v45 = vpop.f32.mrf.mxu1 }
 0x24e   : > { %v1017_v46 = vadd.f32 %v1016_v45, %v2957_v50  ;;  %1403 = vmatprep.mubr.f32.mxu0 %v1156_v42  ;;  %v1157_v51 = vmax.f32 %v1015_v44, 0.0 }
 0x24f   : > { %v1020_v47 = vpop.f32.mrf.mxu1  ;;  %1404 = vmatmul.mubr.f32.gmra.mxu0 %v1155_v43 }
 0x250   : > { %v1158_v48 = vmax.f32 %v1017_v46, 0.0  ;;  %v1021_v52 = vadd.f32 %v1020_v47, %v2954_v49 }
 0x251   : > { %v1022_v53 = vpop.f32.mrf.mxu1 }
 0x252   : > { %v1023_v54 = vadd.f32 %v1022_v53, %v2957_v50  ;;  %1409 = vmatprep.mubr.f32.mxu0 %v1158_v48  ;;  %v1159_v57 = vmax.f32 %v1021_v52, 0.0 }
 0x253   : > { %v1026_v55 = vpop.f32.mrf.mxu1  ;;  %1410 = vmatmul.mubr.f32.gmra.mxu0 %v1157_v51 }
 0x254   : > { %v1160_v56 = vmax.f32 %v1023_v54, 0.0  ;;  %v1027_v58 = vadd.f32 %v1026_v55, %v2954_v49 }
 0x255   : > { %v1028_v59 = vpop.f32.mrf.mxu1 }
 0x256   : > { %v1029_v60 = vadd.f32 %v1028_v59, %v2957_v50  ;;  %1415 = vmatprep.mubr.f32.mxu0 %v1160_v56  ;;  %v1161_v63 = vmax.f32 %v1027_v58, 0.0 }
 0x257   : > { %v1032_v61 = vpop.f32.mrf.mxu1  ;;  %1416 = vmatmul.mubr.f32.gmra.mxu0 %v1159_v57 }
 0x258   : > { %v1162_v62 = vmax.f32 %v1029_v60, 0.0  ;;  %v1033_v0 = vadd.f32 %v1032_v61, %v2954_v49 }
 0x259   : > { %v1034_v2 = vpop.f32.mrf.mxu1 }
 0x25a   : > { %v1035_v3 = vadd.f32 %v1034_v2, %v2957_v50  ;;  %1421 = vmatprep.mubr.f32.mxu0 %v1162_v62  ;;  %v1163_v6 = vmax.f32 %v1033_v0, 0.0 }
 0x25b   : > { %v1038_v4 = vpop.f32.mrf.mxu1  ;;  %1422 = vmatmul.mubr.f32.gmra.mxu0 %v1161_v63 }
 0x25c   : > { %v1164_v5 = vmax.f32 %v1035_v3, 0.0  ;;  %v1039_v7 = vadd.f32 %v1038_v4, %v2954_v49 }
 0x25d   : > { %v1040_v8 = vpop.f32.mrf.mxu1 }
 0x25e   : > { %v1041_v9 = vadd.f32 %v1040_v8, %v2957_v50  ;;  %1427 = vmatprep.mubr.f32.mxu0 %v1164_v5  ;;  %v1165_v12 = vmax.f32 %v1039_v7, 0.0 }
 0x25f   : > { %v1044_v10 = vpop.f32.mrf.mxu1  ;;  %1428 = vmatmul.mubr.f32.gmra.mxu0 %v1163_v6 }
 0x260   : > { %v1166_v11 = vmax.f32 %v1041_v9, 0.0  ;;  %v1045_v1 = vadd.f32 %v1044_v10, %v2954_v49 }
 0x261   : > { %v1046_v13 = vpop.f32.mrf.mxu1 }
 0x262   : > { %v1047_v14 = vadd.f32 %v1046_v13, %v2957_v50  ;;  %1433 = vmatprep.mubr.f32.mxu0 %v1166_v11  ;;  %v1167_v17 = vmax.f32 %v1045_v1, 0.0 }
 0x263   : > { %v1050_v15 = vpop.f32.mrf.mxu1  ;;  %1434 = vmatmul.mubr.f32.gmra.mxu0 %v1165_v12 }
 0x264   : > { %v1168_v16 = vmax.f32 %v1047_v14, 0.0  ;;  %v1051_v18 = vadd.f32 %v1050_v15, %v2954_v49 }
 0x265   : > { %v1052_v19 = vpop.f32.mrf.mxu1 }
 0x266   : > { %v1053_v20 = vadd.f32 %v1052_v19, %v2957_v50  ;;  %1439 = vmatprep.mubr.f32.mxu0 %v1168_v16  ;;  %v1169_v29 = vmax.f32 %v1051_v18, 0.0 }
 0x267   : > { %v1056_v24 = vpop.f32.mrf.mxu1  ;;  %1440 = vmatmul.mubr.f32.gmra.mxu0 %v1167_v17 }
 0x268   : > { %v1170_v25 = vmax.f32 %v1053_v20, 0.0  ;;  %v1057_v31 = vadd.f32 %v1056_v24, %v2954_v49 }
 0x269   : > { %v1058_v33 = vpop.f32.mrf.mxu1 }
 0x26a   : > { %v1059_v32 = vadd.f32 %v1058_v33, %v2957_v50  ;;  %1445 = vmatprep.mubr.f32.mxu0 %v1170_v25  ;;  %v1171_v37 = vmax.f32 %v1057_v31, 0.0 }
 0x26b   : > { %v1062_v35 = vpop.f32.mrf.mxu1  ;;  %1446 = vmatmul.mubr.f32.gmra.mxu0 %v1169_v29 }
 0x26c   : > { %v1172_v36 = vmax.f32 %v1059_v32, 0.0  ;;  %v1063_v38 = vadd.f32 %v1062_v35, %v2954_v49 }
 0x26d   : > { %v1064_v39 = vpop.f32.mrf.mxu1 }
 0x26e   : > { %v1065_v40 = vadd.f32 %v1064_v39, %v2957_v50  ;;  %1451 = vmatprep.mubr.f32.mxu0 %v1172_v36  ;;  %v1173_v43 = vmax.f32 %v1063_v38, 0.0 }
 0x26f   : > { %v1068_v41 = vpop.f32.mrf.mxu1  ;;  %1452 = vmatmul.mubr.f32.gmra.mxu0 %v1171_v37 }
 0x270   : > { %v1174_v42 = vmax.f32 %v1065_v40, 0.0  ;;  %v1069_v44 = vadd.f32 %v1068_v41, %v2954_v49 }
 0x271   : > { %v1070_v45 = vpop.f32.mrf.mxu1 }
 0x272   : > { %v1071_v46 = vadd.f32 %v1070_v45, %v2957_v50  ;;  %1457 = vmatprep.mubr.f32.mxu0 %v1174_v42  ;;  %v1175_v51 = vmax.f32 %v1069_v44, 0.0 }
 0x273   : > { %v1074_v47 = vpop.f32.mrf.mxu1  ;;  %1458 = vmatmul.mubr.f32.gmra.mxu0 %v1173_v43 }
 0x274   : > { %v1176_v48 = vmax.f32 %v1071_v46, 0.0  ;;  %v1075_v52 = vadd.f32 %v1074_v47, %v2954_v49 }
 0x275   : > { %v1076_v53 = vpop.f32.mrf.mxu1 }
 0x276   : > { %v1077_v54 = vadd.f32 %v1076_v53, %v2957_v50  ;;  %1463 = vmatprep.mubr.f32.mxu0 %v1176_v48  ;;  %v1177_v57 = vmax.f32 %v1075_v52, 0.0  ;;  %v1261_v53 = vld [vmem:[%s3349_s6] sm:$0x3] }
 0x277   : > { %v1080_v55 = vpop.f32.mrf.mxu1  ;;  %1464 = vmatmul.mubr.f32.gmra.mxu0 %v1175_v51 }
 0x278   : > { %v1178_v56 = vmax.f32 %v1077_v54, 0.0  ;;  %v1081_v58 = vadd.f32 %v1080_v55, %v2954_v49  ;;  %v3027_v54 = vrot.slane %v1261_v53, %v2875_v30  ;;  %v3030_v55 = vrot.slane %v1261_v53, %v2872_v27 }
 0x279   : > { %v1082_v59 = vpop.f32.mrf.mxu1 }
 0x27a   : > { %v1083_v60 = vadd.f32 %v1082_v59, %v2957_v50  ;;  %1469 = vmatprep.mubr.f32.mxu0 %v1178_v56  ;;  %v1179_v63 = vmax.f32 %v1081_v58, 0.0 }
 0x27b   : > { %v1086_v61 = vpop.f32.mrf.mxu1  ;;  %1470 = vmatmul.mubr.f32.gmra.mxu0 %v1177_v57 }
 0x27c   : > { %v1180_v62 = vmax.f32 %v1083_v60, 0.0  ;;  %v1087_v0 = vadd.f32 %v1086_v61, %v2954_v49 }
 0x27d   : > { %v1088_v2 = vpop.f32.mrf.mxu1 }
 0x27e   : > { %v1089_v3 = vadd.f32 %v1088_v2, %v2957_v50  ;;  %1475 = vmatprep.mubr.f32.mxu0 %v1180_v62  ;;  %v1181_v6 = vmax.f32 %v1087_v0, 0.0 }
 0x27f   : > { %v1092_v4 = vpop.f32.mrf.mxu1  ;;  %1476 = vmatmul.mubr.f32.gmra.mxu0 %v1179_v63 }
 0x280   : > { %v1182_v5 = vmax.f32 %v1089_v3, 0.0  ;;  %v1093_v7 = vadd.f32 %v1092_v4, %v2954_v49 }
 0x281   : > { %v1094_v8 = vpop.f32.mrf.mxu1 }
 0x282   : > { %v1095_v9 = vadd.f32 %v1094_v8, %v2957_v50  ;;  %1481 = vmatprep.mubr.f32.mxu0 %v1182_v5  ;;  %v1183_v12 = vmax.f32 %v1093_v7, 0.0 }
 0x283   : > { %v1098_v10 = vpop.f32.mrf.mxu1  ;;  %1482 = vmatmul.mubr.f32.gmra.mxu0 %v1181_v6 }
 0x284   : > { %v1184_v11 = vmax.f32 %v1095_v9, 0.0  ;;  %v1099_v1 = vadd.f32 %v1098_v10, %v2954_v49 }
 0x285   : > { %v1100_v13 = vpop.f32.mrf.mxu1 }
 0x286   : > { %v1101_v14 = vadd.f32 %v1100_v13, %v2957_v50  ;;  %1487 = vmatprep.mubr.f32.mxu0 %v1184_v11  ;;  %v1185_v17 = vmax.f32 %v1099_v1, 0.0 }
 0x287   : > { %v1104_v15 = vpop.f32.mrf.mxu1  ;;  %1488 = vmatmul.mubr.f32.gmra.mxu0 %v1183_v12 }
 0x288   : > { %v1186_v16 = vmax.f32 %v1101_v14, 0.0  ;;  %v1105_v18 = vadd.f32 %v1104_v15, %v2954_v49 }
 0x289   : > { %v1106_v19 = vpop.f32.mrf.mxu1 }
 0x28a   : > { %v1107_v20 = vadd.f32 %v1106_v19, %v2957_v50  ;;  %1493 = vmatprep.mubr.f32.mxu0 %v1186_v16  ;;  %v1187_v24 = vmax.f32 %v1105_v18, 0.0 }
 0x28b   : > { %v1110_v21 = vpop.f32.mrf.mxu1  ;;  %1494 = vmatmul.mubr.f32.gmra.mxu0 %v1185_v17 }
 0x28c   : > { %v1188_v22 = vmax.f32 %v1107_v20, 0.0  ;;  %v1111_v25 = vadd.f32 %v1110_v21, %v2954_v49 }
 0x28d   : > { %v1112_v28 = vpop.f32.mrf.mxu1 }
 0x28e   : > { %v1113_v29 = vadd.f32 %v1112_v28, %v2957_v50  ;;  %1499 = vmatprep.mubr.f32.mxu0 %v1188_v22  ;;  %v1189_v34 = vmax.f32 %v1111_v25, 0.0 }
 0x28f   : > { %v1116_v31 = vpop.f32.mrf.mxu1  ;;  %1500 = vmatmul.mubr.f32.gmra.mxu0 %v1187_v24 }
 0x290   : > { %v1190_v33 = vmax.f32 %v1113_v29, 0.0  ;;  %v1117_v32 = vadd.f32 %v1116_v31, %v2954_v49 }
 0x291   : > { %v1118_v35 = vpop.f32.mrf.mxu1 }
 0x292   : > { %v1119_v36 = vadd.f32 %v1118_v35, %v2957_v50  ;;  %1505 = vmatprep.mubr.f32.mxu0 %v1190_v33  ;;  %v1191_v39 = vmax.f32 %v1117_v32, 0.0 }
 0x293   : > { %v1122_v37 = vpop.f32.mrf.mxu1  ;;  %1506 = vmatmul.mubr.f32.gmra.mxu0 %v1189_v34 }
 0x294   : > { %v1192_v38 = vmax.f32 %v1119_v36, 0.0  ;;  %v1123_v40 = vadd.f32 %v1122_v37, %v2954_v49 }
 0x295   : > { %v1124_v41 = vpop.f32.mrf.mxu1 }
 0x296   : > { %v1125_v42 = vadd.f32 %v1124_v41, %v2957_v50  ;;  %1511 = vmatprep.mubr.f32.mxu0 %v1192_v38  ;;  %v1193_v45 = vmax.f32 %v1123_v40, 0.0 }
 0x297   : > { %v1128_v43 = vpop.f32.mrf.mxu1  ;;  %1512 = vmatmul.mubr.f32.gmra.mxu0 %v1191_v39 }
 0x298   : > { %v1194_v44 = vmax.f32 %v1125_v42, 0.0  ;;  %v1129_v46 = vadd.f32 %v1128_v43, %v2954_v49 }
 0x299   : > { %v1130_v47 = vpop.f32.mrf.mxu1 }
 0x29a   : > { %v1131_v48 = vadd.f32 %v1130_v47, %v2957_v50  ;;  %1517 = vmatprep.mubr.f32.mxu0 %v1194_v44  ;;  %v1195_v52 = vmax.f32 %v1129_v46, 0.0 }
 0x29b   : > { %1518 = vmatmul.mubr.f32.gmra.mxu0 %v1193_v45 }
 0x29c   : > { %v1196_v51 = vmax.f32 %v1131_v48, 0.0 }
 0x29e   : > { %1523 = vmatprep.mubr.f32.mxu0 %v1196_v51 }
 0x29f   : > { %1524 = vmatmul.mubr.f32.gmra.mxu0 %v1195_v52 }
 0x2e3   : > { %v1339_v49 = vpop.f32.mrf.mxu0 }
 0x2e4   : > { %v1340_v56 = vadd.f32 %v1339_v49, %v3027_v54 }
 0x2e5   : > { %v1341_v50 = vpop.f32.mrf.mxu0 }
 0x2e6   : > { %v1342_v57 = vadd.f32 %v1341_v50, %v3030_v55  ;;  %v1530_v60 = vmax.f32 %v1340_v56, 0.0 }
 0x2e7   : > { %v1345_v58 = vpop.f32.mrf.mxu0 }
 0x2e8   : > { %v1531_v59 = vmax.f32 %v1342_v57, 0.0  ;;  %v1346_v61 = vadd.f32 %v1345_v58, %v3027_v54 }
 0x2e9   : > { %v1347_v62 = vpop.f32.mrf.mxu0 }
 0x2ea   : > { %v1348_v63 = vadd.f32 %v1347_v62, %v3030_v55  ;;  %1734 = vmatprep.mubr.f32.mxu1 %v1531_v59  ;;  %v1532_v3 = vmax.f32 %v1346_v61, 0.0 }
 0x2eb   : > { %v1351_v0 = vpop.f32.mrf.mxu0  ;;  %1735 = vmatmul.mubr.f32.vlgmr.msra.gmra.mxu1 %v1530_v60 }
 0x2ec   : > { %v1533_v2 = vmax.f32 %v1348_v63, 0.0  ;;  %v1352_v4 = vadd.f32 %v1351_v0, %v3027_v54 }
 0x2ed   : > { %v1353_v5 = vpop.f32.mrf.mxu0 }
 0x2ee   : > { %v1354_v6 = vadd.f32 %v1353_v5, %v3030_v55  ;;  %1740 = vmatprep.mubr.f32.mxu1 %v1533_v2  ;;  %v1534_v9 = vmax.f32 %v1352_v4, 0.0 }
 0x2ef   : > { %v1357_v7 = vpop.f32.mrf.mxu0  ;;  %1741 = vmatmul.mubr.f32.gmra.mxu1 %v1532_v3 }
 0x2f0   : > { %v1535_v8 = vmax.f32 %v1354_v6, 0.0  ;;  %v1358_v10 = vadd.f32 %v1357_v7, %v3027_v54 }
 0x2f1   : > { %v1359_v11 = vpop.f32.mrf.mxu0 }
 0x2f2   : > { %v1360_v12 = vadd.f32 %v1359_v11, %v3030_v55  ;;  %1746 = vmatprep.mubr.f32.mxu1 %v1535_v8  ;;  %v1536_v14 = vmax.f32 %v1358_v10, 0.0 }
 0x2f3   : > { %v1363_v1 = vpop.f32.mrf.mxu0  ;;  %1747 = vmatmul.mubr.f32.gmra.mxu1 %v1534_v9 }
 0x2f4   : > { %v1537_v13 = vmax.f32 %v1360_v12, 0.0  ;;  %v1364_v15 = vadd.f32 %v1363_v1, %v3027_v54 }
 0x2f5   : > { %v1365_v16 = vpop.f32.mrf.mxu0 }
 0x2f6   : > { %v1366_v17 = vadd.f32 %v1365_v16, %v3030_v55  ;;  %1752 = vmatprep.mubr.f32.mxu1 %v1537_v13  ;;  %v1538_v20 = vmax.f32 %v1364_v15, 0.0 }
 0x2f7   : > { %v1369_v18 = vpop.f32.mrf.mxu0  ;;  %1753 = vmatmul.mubr.f32.gmra.mxu1 %v1536_v14 }
 0x2f8   : > { %v1539_v19 = vmax.f32 %v1366_v17, 0.0  ;;  %v1370_v21 = vadd.f32 %v1369_v18, %v3027_v54 }
 0x2f9   : > { %v1371_v22 = vpop.f32.mrf.mxu0 }
 0x2fa   : > { %v1372_v24 = vadd.f32 %v1371_v22, %v3030_v55  ;;  %1758 = vmatprep.mubr.f32.mxu1 %v1539_v19  ;;  %v1540_v29 = vmax.f32 %v1370_v21, 0.0 }
 0x2fb   : > { %v1375_v25 = vpop.f32.mrf.mxu0  ;;  %1759 = vmatmul.mubr.f32.gmra.mxu1 %v1538_v20 }
 0x2fc   : > { %v1541_v28 = vmax.f32 %v1372_v24, 0.0  ;;  %v1376_v31 = vadd.f32 %v1375_v25, %v3027_v54 }
 0x2fd   : > { %v1377_v33 = vpop.f32.mrf.mxu0 }
 0x2fe   : > { %v1378_v34 = vadd.f32 %v1377_v33, %v3030_v55  ;;  %1764 = vmatprep.mubr.f32.mxu1 %v1541_v28  ;;  %v1542_v36 = vmax.f32 %v1376_v31, 0.0 }
 0x2ff   : > { %v1381_v32 = vpop.f32.mrf.mxu0  ;;  %1765 = vmatmul.mubr.f32.gmra.mxu1 %v1540_v29 }
 0x300   : > { %v1543_v35 = vmax.f32 %v1378_v34, 0.0  ;;  %v1382_v37 = vadd.f32 %v1381_v32, %v3027_v54 }
 0x301   : > { %v1383_v38 = vpop.f32.mrf.mxu0 }
 0x302   : > { %v1384_v39 = vadd.f32 %v1383_v38, %v3030_v55  ;;  %1770 = vmatprep.mubr.f32.mxu1 %v1543_v35  ;;  %v1544_v42 = vmax.f32 %v1382_v37, 0.0 }
 0x303   : > { %v1387_v40 = vpop.f32.mrf.mxu0  ;;  %1771 = vmatmul.mubr.f32.gmra.mxu1 %v1542_v36 }
 0x304   : > { %v1545_v41 = vmax.f32 %v1384_v39, 0.0  ;;  %v1388_v43 = vadd.f32 %v1387_v40, %v3027_v54 }
 0x305   : > { %v1389_v44 = vpop.f32.mrf.mxu0 }
 0x306   : > { %v1390_v45 = vadd.f32 %v1389_v44, %v3030_v55  ;;  %1776 = vmatprep.mubr.f32.mxu1 %v1545_v41  ;;  %v1546_v48 = vmax.f32 %v1388_v43, 0.0 }
 0x307   : > { %v1393_v46 = vpop.f32.mrf.mxu0  ;;  %1777 = vmatmul.mubr.f32.gmra.mxu1 %v1544_v42 }
 0x308   : > { %v1547_v47 = vmax.f32 %v1390_v45, 0.0  ;;  %v1394_v51 = vadd.f32 %v1393_v46, %v3027_v54 }
 0x309   : > { %v1395_v52 = vpop.f32.mrf.mxu0 }
 0x30a   : > { %v1396_v53 = vadd.f32 %v1395_v52, %v3030_v55  ;;  %1782 = vmatprep.mubr.f32.mxu1 %v1547_v47  ;;  %v1548_v50 = vmax.f32 %v1394_v51, 0.0 }
 0x30b   : > { %v1399_v49 = vpop.f32.mrf.mxu0  ;;  %1783 = vmatmul.mubr.f32.gmra.mxu1 %v1546_v48 }
 0x30c   : > { %v1549_v56 = vmax.f32 %v1396_v53, 0.0  ;;  %v1400_v57 = vadd.f32 %v1399_v49, %v3027_v54 }
 0x30d   : > { %v1401_v58 = vpop.f32.mrf.mxu0 }
 0x30e   : > { %v1402_v59 = vadd.f32 %v1401_v58, %v3030_v55  ;;  %1788 = vmatprep.mubr.f32.mxu1 %v1549_v56  ;;  %v1550_v62 = vmax.f32 %v1400_v57, 0.0 }
 0x30f   : > { %v1405_v60 = vpop.f32.mrf.mxu0  ;;  %1789 = vmatmul.mubr.f32.gmra.mxu1 %v1548_v50 }
 0x310   : > { %v1551_v61 = vmax.f32 %v1402_v59, 0.0  ;;  %v1406_v63 = vadd.f32 %v1405_v60, %v3027_v54 }
 0x311   : > { %v1407_v0 = vpop.f32.mrf.mxu0 }
 0x312   : > { %v1408_v2 = vadd.f32 %v1407_v0, %v3030_v55  ;;  %1794 = vmatprep.mubr.f32.mxu1 %v1551_v61  ;;  %v1552_v5 = vmax.f32 %v1406_v63, 0.0 }
 0x313   : > { %v1411_v3 = vpop.f32.mrf.mxu0  ;;  %1795 = vmatmul.mubr.f32.gmra.mxu1 %v1550_v62 }
 0x314   : > { %v1553_v4 = vmax.f32 %v1408_v2, 0.0  ;;  %v1412_v6 = vadd.f32 %v1411_v3, %v3027_v54 }
 0x315   : > { %v1413_v7 = vpop.f32.mrf.mxu0 }
 0x316   : > { %v1414_v8 = vadd.f32 %v1413_v7, %v3030_v55  ;;  %1800 = vmatprep.mubr.f32.mxu1 %v1553_v4  ;;  %v1554_v11 = vmax.f32 %v1412_v6, 0.0 }
 0x317   : > { %v1417_v9 = vpop.f32.mrf.mxu0  ;;  %1801 = vmatmul.mubr.f32.gmra.mxu1 %v1552_v5 }
 0x318   : > { %v1555_v10 = vmax.f32 %v1414_v8, 0.0  ;;  %v1418_v12 = vadd.f32 %v1417_v9, %v3027_v54 }
 0x319   : > { %v1419_v1 = vpop.f32.mrf.mxu0 }
 0x31a   : > { %v1420_v13 = vadd.f32 %v1419_v1, %v3030_v55  ;;  %1806 = vmatprep.mubr.f32.mxu1 %v1555_v10  ;;  %v1556_v16 = vmax.f32 %v1418_v12, 0.0 }
 0x31b   : > { %v1423_v14 = vpop.f32.mrf.mxu0  ;;  %1807 = vmatmul.mubr.f32.gmra.mxu1 %v1554_v11 }
 0x31c   : > { %v1557_v15 = vmax.f32 %v1420_v13, 0.0  ;;  %v1424_v17 = vadd.f32 %v1423_v14, %v3027_v54 }
 0x31d   : > { %v1425_v18 = vpop.f32.mrf.mxu0 }
 0x31e   : > { %v1426_v19 = vadd.f32 %v1425_v18, %v3030_v55  ;;  %1812 = vmatprep.mubr.f32.mxu1 %v1557_v15  ;;  %v1558_v22 = vmax.f32 %v1424_v17, 0.0 }
 0x31f   : > { %v1429_v20 = vpop.f32.mrf.mxu0  ;;  %1813 = vmatmul.mubr.f32.gmra.mxu1 %v1556_v16 }
 0x320   : > { %v1559_v21 = vmax.f32 %v1426_v19, 0.0  ;;  %v1430_v24 = vadd.f32 %v1429_v20, %v3027_v54 }
 0x321   : > { %v1431_v25 = vpop.f32.mrf.mxu0 }
 0x322   : > { %v1432_v28 = vadd.f32 %v1431_v25, %v3030_v55  ;;  %1818 = vmatprep.mubr.f32.mxu1 %v1559_v21  ;;  %v1560_v33 = vmax.f32 %v1430_v24, 0.0 }
 0x323   : > { %v1435_v29 = vpop.f32.mrf.mxu0  ;;  %1819 = vmatmul.mubr.f32.gmra.mxu1 %v1558_v22 }
 0x324   : > { %v1561_v31 = vmax.f32 %v1432_v28, 0.0  ;;  %v1436_v34 = vadd.f32 %v1435_v29, %v3027_v54 }
 0x325   : > { %v1437_v32 = vpop.f32.mrf.mxu0 }
 0x326   : > { %v1438_v35 = vadd.f32 %v1437_v32, %v3030_v55  ;;  %1824 = vmatprep.mubr.f32.mxu1 %v1561_v31  ;;  %v1562_v38 = vmax.f32 %v1436_v34, 0.0 }
 0x327   : > { %v1441_v36 = vpop.f32.mrf.mxu0  ;;  %1825 = vmatmul.mubr.f32.gmra.mxu1 %v1560_v33 }
 0x328   : > { %v1563_v37 = vmax.f32 %v1438_v35, 0.0  ;;  %v1442_v39 = vadd.f32 %v1441_v36, %v3027_v54 }
 0x329   : > { %v1443_v40 = vpop.f32.mrf.mxu0 }
 0x32a   : > { %v1444_v41 = vadd.f32 %v1443_v40, %v3030_v55  ;;  %1830 = vmatprep.mubr.f32.mxu1 %v1563_v37  ;;  %v1564_v44 = vmax.f32 %v1442_v39, 0.0 }
 0x32b   : > { %v1447_v42 = vpop.f32.mrf.mxu0  ;;  %1831 = vmatmul.mubr.f32.gmra.mxu1 %v1562_v38 }
 0x32c   : > { %v1565_v43 = vmax.f32 %v1444_v41, 0.0  ;;  %v1448_v45 = vadd.f32 %v1447_v42, %v3027_v54 }
 0x32d   : > { %v1449_v46 = vpop.f32.mrf.mxu0 }
 0x32e   : > { %v1450_v47 = vadd.f32 %v1449_v46, %v3030_v55  ;;  %1836 = vmatprep.mubr.f32.mxu1 %v1565_v43  ;;  %v1566_v52 = vmax.f32 %v1448_v45, 0.0 }
 0x32f   : > { %v1453_v48 = vpop.f32.mrf.mxu0  ;;  %1837 = vmatmul.mubr.f32.gmra.mxu1 %v1564_v44 }
 0x330   : > { %v1567_v51 = vmax.f32 %v1450_v47, 0.0  ;;  %v1454_v53 = vadd.f32 %v1453_v48, %v3027_v54 }
 0x331   : > { %v1455_v49 = vpop.f32.mrf.mxu0 }
 0x332   : > { %v1456_v56 = vadd.f32 %v1455_v49, %v3030_v55  ;;  %1842 = vmatprep.mubr.f32.mxu1 %v1567_v51  ;;  %v1568_v58 = vmax.f32 %v1454_v53, 0.0 }
 0x333   : > { %v1459_v50 = vpop.f32.mrf.mxu0  ;;  %1843 = vmatmul.mubr.f32.gmra.mxu1 %v1566_v52 }
 0x334   : > { %v1569_v57 = vmax.f32 %v1456_v56, 0.0  ;;  %v1460_v59 = vadd.f32 %v1459_v50, %v3027_v54 }
 0x335   : > { %v1461_v60 = vpop.f32.mrf.mxu0 }
 0x336   : > { %v1462_v61 = vadd.f32 %v1461_v60, %v3030_v55  ;;  %1848 = vmatprep.mubr.f32.mxu1 %v1569_v57  ;;  %v1570_v0 = vmax.f32 %v1460_v59, 0.0 }
 0x337   : > { %v1465_v62 = vpop.f32.mrf.mxu0  ;;  %1849 = vmatmul.mubr.f32.gmra.mxu1 %v1568_v58 }
 0x338   : > { %v1571_v63 = vmax.f32 %v1462_v61, 0.0  ;;  %v1466_v2 = vadd.f32 %v1465_v62, %v3027_v54 }
 0x339   : > { %v1467_v3 = vpop.f32.mrf.mxu0 }
 0x33a   : > { %v1468_v4 = vadd.f32 %v1467_v3, %v3030_v55  ;;  %1854 = vmatprep.mubr.f32.mxu1 %v1571_v63  ;;  %v1572_v7 = vmax.f32 %v1466_v2, 0.0 }
 0x33b   : > { %v1471_v5 = vpop.f32.mrf.mxu0  ;;  %1855 = vmatmul.mubr.f32.gmra.mxu1 %v1570_v0 }
 0x33c   : > { %v1573_v6 = vmax.f32 %v1468_v4, 0.0  ;;  %v1472_v8 = vadd.f32 %v1471_v5, %v3027_v54 }
 0x33d   : > { %v1473_v9 = vpop.f32.mrf.mxu0 }
 0x33e   : > { %v1474_v10 = vadd.f32 %v1473_v9, %v3030_v55  ;;  %1860 = vmatprep.mubr.f32.mxu1 %v1573_v6  ;;  %v1574_v1 = vmax.f32 %v1472_v8, 0.0 }
 0x33f   : > { %v1477_v11 = vpop.f32.mrf.mxu0  ;;  %1861 = vmatmul.mubr.f32.gmra.mxu1 %v1572_v7 }
 0x340   : > { %v1575_v12 = vmax.f32 %v1474_v10, 0.0  ;;  %v1478_v13 = vadd.f32 %v1477_v11, %v3027_v54 }
 0x341   : > { %v1479_v14 = vpop.f32.mrf.mxu0 }
 0x342   : > { %v1480_v15 = vadd.f32 %v1479_v14, %v3030_v55  ;;  %1866 = vmatprep.mubr.f32.mxu1 %v1575_v12  ;;  %v1576_v18 = vmax.f32 %v1478_v13, 0.0 }
 0x343   : > { %v1483_v16 = vpop.f32.mrf.mxu0  ;;  %1867 = vmatmul.mubr.f32.gmra.mxu1 %v1574_v1 }
 0x344   : > { %v1577_v17 = vmax.f32 %v1480_v15, 0.0  ;;  %v1484_v19 = vadd.f32 %v1483_v16, %v3027_v54 }
 0x345   : > { %v1485_v20 = vpop.f32.mrf.mxu0 }
 0x346   : > { %v1486_v21 = vadd.f32 %v1485_v20, %v3030_v55  ;;  %1872 = vmatprep.mubr.f32.mxu1 %v1577_v17  ;;  %v1578_v25 = vmax.f32 %v1484_v19, 0.0 }
 0x347   : > { %v1489_v22 = vpop.f32.mrf.mxu0  ;;  %1873 = vmatmul.mubr.f32.gmra.mxu1 %v1576_v18 }
 0x348   : > { %v1579_v24 = vmax.f32 %v1486_v21, 0.0  ;;  %v1490_v28 = vadd.f32 %v1489_v22, %v3027_v54 }
 0x349   : > { %v1491_v29 = vpop.f32.mrf.mxu0 }
 0x34a   : > { %v1492_v31 = vadd.f32 %v1491_v29, %v3030_v55  ;;  %1878 = vmatprep.mubr.f32.mxu1 %v1579_v24  ;;  %v1580_v32 = vmax.f32 %v1490_v28, 0.0 }
 0x34b   : > { %v1495_v33 = vpop.f32.mrf.mxu0  ;;  %1879 = vmatmul.mubr.f32.gmra.mxu1 %v1578_v25 }
 0x34c   : > { %v1581_v34 = vmax.f32 %v1492_v31, 0.0  ;;  %v1496_v35 = vadd.f32 %v1495_v33, %v3027_v54 }
 0x34d   : > { %v1497_v36 = vpop.f32.mrf.mxu0 }
 0x34e   : > { %v1498_v37 = vadd.f32 %v1497_v36, %v3030_v55  ;;  %1884 = vmatprep.mubr.f32.mxu1 %v1581_v34  ;;  %v1582_v40 = vmax.f32 %v1496_v35, 0.0 }
 0x34f   : > { %v1501_v38 = vpop.f32.mrf.mxu0  ;;  %1885 = vmatmul.mubr.f32.gmra.mxu1 %v1580_v32 }
 0x350   : > { %v1583_v39 = vmax.f32 %v1498_v37, 0.0  ;;  %v1502_v41 = vadd.f32 %v1501_v38, %v3027_v54 }
 0x351   : > { %v1503_v42 = vpop.f32.mrf.mxu0 }
 0x352   : > { %v1504_v43 = vadd.f32 %v1503_v42, %v3030_v55  ;;  %1890 = vmatprep.mubr.f32.mxu1 %v1583_v39  ;;  %v1584_v46 = vmax.f32 %v1502_v41, 0.0  ;;  %v1658_v39 = vld [vmem:[%s3351_s8] sm:$0x3] }
 0x353   : > { %v1507_v44 = vpop.f32.mrf.mxu0  ;;  %1891 = vmatmul.mubr.f32.gmra.mxu1 %v1582_v40  ;;  %v3140_v41 = vrot.slane %v1658_v39, %v2875_v30 }
 0x354   : > { %v1585_v45 = vmax.f32 %v1504_v43, 0.0  ;;  %v1508_v47 = vadd.f32 %v1507_v44, %v3027_v54  ;;  %v3143_v43 = vrot.slane %v1658_v39, %v2872_v27 }
 0x355   : > { %v1509_v48 = vpop.f32.mrf.mxu0 }
 0x356   : > { %v1510_v51 = vadd.f32 %v1509_v48, %v3030_v55  ;;  %1896 = vmatprep.mubr.f32.mxu1 %v1585_v45  ;;  %v1586_v49 = vmax.f32 %v1508_v47, 0.0  ;;  %v3151_v48 = vld [vmem:[%s3352_s9] sm:$0x3] }
 0x357   : > { %v1513_v52 = vpop.f32.mrf.mxu0  ;;  %1897 = vmatmul.mubr.f32.gmra.mxu1 %v1584_v46 }
 0x358   : > { %v1587_v53 = vmax.f32 %v1510_v51, 0.0  ;;  %v1514_v56 = vadd.f32 %v1513_v52, %v3027_v54  ;;  %v2010_v52 = vrot.slane %v3151_v48, %v2872_v27 }
 0x359   : > { %v1515_v50 = vpop.f32.mrf.mxu0 }
 0x35a   : > { %v1516_v57 = vadd.f32 %v1515_v50, %v3030_v55  ;;  %1902 = vmatprep.mubr.f32.mxu1 %v1587_v53  ;;  %v1588_v60 = vmax.f32 %v1514_v56, 0.0  ;;  %2077 = vmatprep.mubr.f32.mxu0 %v2010_v52 }
 0x35b   : > { %v1519_v58 = vpop.f32.mrf.mxu0  ;;  %1903 = vmatmul.mubr.f32.gmra.mxu1 %v1586_v49 }
 0x35c   : > { %v1589_v59 = vmax.f32 %v1516_v57, 0.0  ;;  %v1520_v61 = vadd.f32 %v1519_v58, %v3027_v54 }
 0x35d   : > { %v1521_v62 = vpop.f32.mrf.mxu0 }
 0x35e   : > { %v1522_v63 = vadd.f32 %v1521_v62, %v3030_v55  ;;  %1908 = vmatprep.mubr.f32.mxu1 %v1589_v59  ;;  %v1590_v3 = vmax.f32 %v1520_v61, 0.0  ;;  %v1992_v59 = vld [vmem:[#allocation2] sm:$0x1]  ;;  %v2565_v61 = vmov 0  }
 0x35f   : > { %v1525_v0 = vpop.f32.mrf.mxu0  ;;  %1909 = vmatmul.mubr.f32.gmra.mxu1 %v1588_v60  ;;  %2348 = vset.pattern.permute.xlu0 %v2565_v61 }
 0x360   : > { %v1591_v2 = vmax.f32 %v1522_v63, 0.0  ;;  %v1526_v4 = vadd.f32 %v1525_v0, %v3027_v54  ;;  %1995 = vperm.xlu0 %2348, %v1992_v59  }
 0x361   : > { %v1527_v5 = vpop.f32.mrf.mxu0 }
 0x362   : > { %v1528_v6 = vadd.f32 %v1527_v5, %v3030_v55  ;;  %1914 = vmatprep.mubr.f32.mxu1 %v1591_v2  ;;  %v1592_v8 = vmax.f32 %v1526_v4, 0.0 }
 0x363   : > { %1915 = vmatmul.mubr.f32.gmra.mxu1 %v1590_v3 }
 0x364   : > { %v1593_v7 = vmax.f32 %v1528_v6, 0.0 }
 0x366   : > { %1920 = vmatprep.mubr.f32.mxu1 %v1593_v7 }
 0x367   : > { %1921 = vmatmul.mubr.f32.gmra.mxu1 %v1592_v8 }
 0x3ab   : > { %v3096_v9 = vpop.f32.mrf.mxu1 }
 0x3ad   : > { %v3098_v10 = vpop.f32.mrf.mxu1 }
 0x3af   : > { %v3100_v11 = vpop.f32.mrf.mxu1 }
 0x3b1   : > { %v3102_v12 = vpop.f32.mrf.mxu1 }
 0x3b3   : > { %v3104_v1 = vpop.f32.mrf.mxu1 }
 0x3b5   : > { %v3106_v54 = vpop.f32.mrf.mxu1 }
 0x3b7   : > { %v3108_v13 = vpop.f32.mrf.mxu1 }
 0x3b9   : > { %v3110_v55 = vpop.f32.mrf.mxu1 }
 0x3bb   : > { %v3112_v14 = vpop.f32.mrf.mxu1 }
 0x3bd   : > { %v3114_v15 = vpop.f32.mrf.mxu1 }
 0x3bf   : > { %v3116_v16 = vpop.f32.mrf.mxu1 }
 0x3c1   : > { %v3118_v17 = vpop.f32.mrf.mxu1 }
 0x3c3   : > { %v3120_v18 = vpop.f32.mrf.mxu1 }
 0x3c5   : > { %v3122_v19 = vpop.f32.mrf.mxu1 }
 0x3c7   : > { %v3124_v20 = vpop.f32.mrf.mxu1 }
 0x3c9   : > { %v3126_v21 = vpop.f32.mrf.mxu1 }
 0x3cb   : > { %v3128_v22 = vpop.f32.mrf.mxu1 }
 0x3cd   : > { %v3130_v24 = vpop.f32.mrf.mxu1 }
 0x3cf   : > { %v3132_v25 = vpop.f32.mrf.mxu1 }
 0x3d1   : > { %v3134_v28 = vpop.f32.mrf.mxu1 }
 0x3d3   : > { %v1796_v29 = vpop.f32.mrf.mxu1 }
 0x3d5   : > { %v1798_v31 = vpop.f32.mrf.mxu1 }
 0x3d6   : > { %v1799_v39 = vadd.f32 %v1798_v31, %v3143_v43  ;;  %v1791_v31 = vadd.f32 %v3132_v25, %v3140_v41  ;;  %v1781_v25 = vadd.f32 %v3126_v21, %v3143_v43  ;;  %v1773_v21 = vadd.f32 %v3120_v18, %v3140_v41 }
 0x3d7   : > { %v1802_v33 = vpop.f32.mrf.mxu1  ;;  %v1763_v18 = vadd.f32 %v3114_v15, %v3143_v43  ;;  %v1755_v15 = vadd.f32 %v3108_v13, %v3140_v41  ;;  %v1743_v13 = vadd.f32 %v3100_v11, %v3140_v41 }
 0x3d9   : > { %v1804_v34 = vpop.f32.mrf.mxu1 }
 0x3da   : > { %v1805_v7 = vadd.f32 %v1804_v34, %v3143_v43 }
 0x3db   : > { %v1808_v32 = vpop.f32.mrf.mxu1 }
 0x3dc   : > { %v1809_v4 = vadd.f32 %v1808_v32, %v3140_v41  ;;  %v1797_v32 = vadd.f32 %v1796_v29, %v3140_v41  ;;  %v1787_v29 = vadd.f32 %v3130_v24, %v3143_v43  ;;  %v1779_v24 = vadd.f32 %v3124_v20, %v3140_v41 }
 0x3dd   : > { %v1810_v35 = vpop.f32.mrf.mxu1  ;;  %v1769_v20 = vadd.f32 %v3118_v17, %v3143_v43  ;;  %v1761_v17 = vadd.f32 %v3112_v14, %v3140_v41 }
 0x3de   : > { %v1811_v0 = vadd.f32 %v1810_v35, %v3143_v43  ;;  %v1951_v35 = vmax.f32 %v1809_v4, 0.0 }
 0x3df   : > { %v1814_v36 = vpop.f32.mrf.mxu1 }
 0x3e0   : > { %v1815_v27 = vadd.f32 %v1814_v36, %v3140_v41  ;;  %v1952_v8 = vmax.f32 %v1811_v0, 0.0  ;;  %v1803_v36 = vadd.f32 %v1802_v33, %v3140_v41 }
 0x3e1   : > { %v1816_v37 = vpop.f32.mrf.mxu1 }
 0x3e2   : > { %v1817_v57 = vadd.f32 %v1816_v37, %v3143_v43  ;;  %v1953_v5 = vmax.f32 %v1815_v27, 0.0  ;;  %v1949_v34 = vmax.f32 %v1803_v36, 0.0 }
 0x3e3   : > { %v1820_v38 = vpop.f32.mrf.mxu1 }
 0x3e4   : > { %v1821_v49 = vadd.f32 %v1820_v38, %v3140_v41  ;;  %v1954_v2 = vmax.f32 %v1817_v57, 0.0 }
 0x3e5   : > { %v1822_v40 = vpop.f32.mrf.mxu1 }
 0x3e6   : > { %v1823_v46 = vadd.f32 %v1822_v40, %v3143_v43  ;;  %v1955_v62 = vmax.f32 %v1821_v49, 0.0  ;;  %v1950_v40 = vmax.f32 %v1805_v7, 0.0 }
 0x3e7   : > { %v1826_v42 = vpop.f32.mrf.mxu1 }
 0x3e8   : > { %v1827_v44 = vadd.f32 %v1826_v42, %v3140_v41  ;;  %v1956_v58 = vmax.f32 %v1823_v46, 0.0  ;;  %v1948_v46 = vmax.f32 %v1799_v39, 0.0 }
 0x3e9   : > { %v1828_v45 = vpop.f32.mrf.mxu1 }
 0x3ea   : > { %v1829_v47 = vadd.f32 %v1828_v45, %v3143_v43  ;;  %v1957_v56 = vmax.f32 %v1827_v44, 0.0  ;;  %v1793_v45 = vadd.f32 %v3134_v28, %v3143_v43  ;;  %v1785_v28 = vadd.f32 %v3128_v22, %v3140_v41 }
 0x3eb   : > { %v3153_v51 = vpop.f32.mrf.mxu1  ;;  %v1775_v22 = vadd.f32 %v3122_v19, %v3143_v43  ;;  %v1767_v19 = vadd.f32 %v3116_v16, %v3140_v41  ;;  %v1757_v16 = vadd.f32 %v3110_v55, %v3143_v43  ;;  %v1933_v55 = vmax.f32 %v1755_v15, 0.0 }
 0x3ec   : > { %v1958_v53 = vmax.f32 %v1829_v47, 0.0  ;;  %v1947_v47 = vmax.f32 %v1797_v32, 0.0  ;;  %v1943_v61 = vmax.f32 %v1785_v28, 0.0 }
 0x3ed   : > { %v3158_v50 = vpop.f32.mrf.mxu1 }
 0x3ee   : > { %2013 = vmatprep.subr.mxu0 %v1958_v53  ;;  %v1946_v53 = vmax.f32 %v1793_v45, 0.0 }
 0x3ef   : > { %v3161_v60 = vpop.f32.mrf.mxu1  ;;  %2014 = vmatpush1.xpose.msra.mxu0 %v1957_v56  ;;  %v1945_v56 = vmax.f32 %v1791_v31, 0.0 }
 0x3f0   : > { %2015 = vmatprep.subr.mxu0 %v1956_v58  ;;  %v1944_v58 = vmax.f32 %v1787_v29, 0.0  ;;  %v1934_v29 = vmax.f32 %v1757_v16, 0.0 }
 0x3f1   : > { %v3164_v63 = vpop.f32.mrf.mxu1 }
 0x3f3   : > { %v3167_v3 = vpop.f32.mrf.mxu1  ;;  %2016 = vmatpush1.xpose.msra.mxu0 %v1955_v62  ;;  %v1942_v62 = vmax.f32 %v1781_v25, 0.0 }
 0x3f4   : > { %2017 = vmatprep.subr.mxu0 %v1954_v2  ;;  %v1941_v2 = vmax.f32 %v1779_v24, 0.0 }
 0x3f5   : > { %v3170_v6 = vpop.f32.mrf.mxu1 }
 0x3f7   : > { %v3173_v37 = vpop.f32.mrf.mxu1  ;;  %2018 = vmatpush1.xpose.msra.mxu0 %v1953_v5  ;;  %v1940_v5 = vmax.f32 %v1775_v22, 0.0 }
 0x3f8   : > { %2019 = vmatprep.subr.mxu0 %v1952_v8  ;;  %v1939_v8 = vmax.f32 %v1773_v21, 0.0 }
 0x3f9   : > { %v3176_v38 = vpop.f32.mrf.mxu1 }
 0x3fb   : > { %v3179_v42 = vpop.f32.mrf.mxu1  ;;  %2020 = vmatpush1.xpose.msra.mxu0 %v1951_v35  ;;  %v1938_v35 = vmax.f32 %v1769_v20, 0.0 }
 0x3fc   : > { %2021 = vmatprep.subr.mxu0 %v1950_v40  ;;  %v1937_v40 = vmax.f32 %v1767_v19, 0.0 }
 0x3fd   : > { %v3182_v44 = vpop.f32.mrf.mxu1 }
 0x3ff   : > { %v3186_v33 = vpop.f32.mrf.mxu1  ;;  %2022 = vmatpush1.xpose.msra.mxu0 %v1949_v34  ;;  %v1936_v34 = vmax.f32 %v1763_v18, 0.0 }
 0x400   : > { %2023 = vmatprep.subr.mxu0 %v1948_v46  ;;  %v1935_v46 = vmax.f32 %v1761_v17, 0.0 }
 0x401   : > { %v3190_v52 = vpop.f32.mrf.mxu1 }
 0x403   : > { %v3194_v49 = vpop.f32.mrf.mxu1  ;;  %2024 = vmatpush1.xpose.msra.mxu0 %v1947_v47  ;;  %v1751_v47 = vadd.f32 %v3106_v54, %v3143_v43 }
 0x404   : > { %2025 = vmatprep.subr.mxu0 %v1946_v53  ;;  %v1749_v53 = vadd.f32 %v3104_v1, %v3140_v41  ;;  %v1737_v1 = vadd.f32 %v3096_v9, %v3140_v41 }
 0x405   : > { %v3198_v57 = vpop.f32.mrf.mxu1  ;;  %v1932_v25 = vmax.f32 %v1751_v47, 0.0 }
 0x406   : > { %v1931_v54 = vmax.f32 %v1749_v53, 0.0 }
 0x407   : > { %v3202_v59 = vpop.f32.mrf.mxu1  ;;  %2026 = vmatpush1.xpose.msra.mxu0 %v1945_v56  ;;  %v1745_v56 = vadd.f32 %v3102_v12, %v3143_v43  ;;  %v1929_v12 = vmax.f32 %v1743_v13, 0.0 }
 0x408   : > { %2027 = vmatprep.subr.mxu0 %v1944_v58 }
 0x409   : > { %v3206_v27 = vpop.f32.mrf.mxu1  ;;  %v1930_v22 = vmax.f32 %v1745_v56, 0.0 }
 0x40b   : > { %v3210_v0 = vpop.f32.mrf.mxu1  ;;  %2028 = vmatpush1.xpose.msra.mxu0 %v1943_v61  ;;  %v1739_v61 = vadd.f32 %v3098_v10, %v3143_v43 }
 0x40c   : > { %2029 = vmatprep.subr.mxu0 %v1942_v62 }
 0x40d   : > { %v3214_v4 = vpop.f32.mrf.mxu1 }
 0x40f   : > { %v3218_v7 = vpop.f32.mrf.mxu1  ;;  %2030 = vmatpush1.xpose.msra.mxu0 %v1941_v2  ;;  %v1928_v2 = vmax.f32 %v1739_v61, 0.0 }
 0x410   : > { %2031 = vmatprep.subr.mxu0 %v1940_v5  ;;  %v1927_v5 = vmax.f32 %v1737_v1, 0.0 }
 0x411   : > { %v3222_v36 = vpop.f32.mrf.mxu1 }
 0x413   : > { %v3226_v39 = vpop.f32.mrf.mxu1  ;;  %2032 = vmatpush1.xpose.msra.mxu0 %v1939_v8 }
 0x414   : > { %2033 = vmatprep.subr.mxu0 %v1938_v35 }
 0x415   : > { %v3230_v32 = vpop.f32.mrf.mxu1 }
 0x417   : > { %v1898_v45 = vpop.f32.mrf.mxu1  ;;  %2034 = vmatpush1.xpose.msra.mxu0 %v1937_v40 }
 0x418   : > { %2035 = vmatprep.subr.mxu0 %v1936_v34  ;;  %v1899_v56 = vadd.f32 %v1898_v45, %v3140_v41  ;;  %v1887_v45 = vadd.f32 %v3218_v7, %v3140_v41  ;;  %v1875_v7 = vadd.f32 %v3202_v59, %v3140_v41  ;;  %v1863_v59 = vadd.f32 %v3186_v33, %v3140_v41 }
 0x419   : > { %v1900_v31 = vpop.f32.mrf.mxu1  ;;  %v1851_v33 = vadd.f32 %v3173_v37, %v3140_v41  ;;  %v1839_v37 = vadd.f32 %v3161_v60, %v3140_v41  ;;  %v2006_v60 = vrot.slane %v3151_v48, %v2875_v30 }
 0x41a   : > { %v1901_v53 = vadd.f32 %v1900_v31, %v3143_v43 }
 0x41b   : > { %v1904_v14 = vpop.f32.mrf.mxu1  ;;  %2036 = vmatpush1.xpose.msra.mxu0 %v1935_v46 }
 0x41c   : > { %2037 = vmatprep.subr.mxu0 %v1934_v29  ;;  %v1905_v47 = vadd.f32 %v1904_v14, %v3140_v41  ;;  %v1982_v13 = vmax.f32 %v1901_v53, 0.0  ;;  %v1889_v14 = vadd.f32 %v3222_v36, %v3143_v43  ;;  %v1877_v36 = vadd.f32 %v3206_v27, %v3143_v43 }
 0x41d   : > { %v1906_v28 = vpop.f32.mrf.mxu1  ;;  %v1865_v27 = vadd.f32 %v3190_v52, %v3143_v43  ;;  %v1853_v52 = vadd.f32 %v3176_v38, %v3143_v43  ;;  %v1841_v38 = vadd.f32 %v3164_v63, %v3143_v43 }
 0x41e   : > { %v1907_v15 = vadd.f32 %v1906_v28, %v3143_v43  ;;  %v1893_v28 = vadd.f32 %v3226_v39, %v3140_v41  ;;  %v1978_v61 = vmax.f32 %v1889_v14, 0.0  ;;  %v1881_v39 = vadd.f32 %v3210_v0, %v3140_v41 }
 0x41f   : > { %v1910_v58 = vpop.f32.mrf.mxu1  ;;  %2038 = vmatpush1.xpose.msra.mxu0 %v1933_v55  ;;  %v1869_v0 = vadd.f32 %v3194_v49, %v3140_v41  ;;  %v1857_v49 = vadd.f32 %v3179_v42, %v3140_v41  ;;  %v1845_v42 = vadd.f32 %v3167_v3, %v3140_v41  ;;  %v1833_v3 = vadd.f32 %v3153_v51, %v3140_v41 }
 0x420   : > { %2039 = vmatprep.subr.mxu0 %v1932_v25  ;;  %v1911_v16 = vadd.f32 %v1910_v58, %v3140_v41  ;;  %v1984_v55 = vmax.f32 %v1907_v15, 0.0  ;;  %v1983_v25 = vmax.f32 %v1905_v47, 0.0  ;;  %v1895_v58 = vadd.f32 %v3230_v32, %v3143_v43 }
 0x421   : > { %v1912_v24 = vpop.f32.mrf.mxu1  ;;  %v1883_v32 = vadd.f32 %v3214_v4, %v3143_v43  ;;  %v1975_v1 = vmax.f32 %v1881_v39, 0.0  ;;  %v1871_v4 = vadd.f32 %v3198_v57, %v3143_v43  ;;  %v1859_v57 = vadd.f32 %v3182_v44, %v3143_v43 }
 0x422   : > { %v1913_v9 = vadd.f32 %v1912_v24, %v3143_v43  ;;  %v1985_v29 = vmax.f32 %v1911_v16, 0.0  ;;  %v1980_v31 = vmax.f32 %v1895_v58, 0.0  ;;  %v1979_v24 = vmax.f32 %v1893_v28, 0.0 }
 0x423   : > { %v1916_v62 = vpop.f32.mrf.mxu1  ;;  %2040 = vmatpush1.xpose.msra.mxu0 %v1931_v54  ;;  %v1981_v54 = vmax.f32 %v1899_v56, 0.0  ;;  %v1847_v44 = vadd.f32 %v3170_v6, %v3143_v43  ;;  %v1835_v6 = vadd.f32 %v3158_v50, %v3143_v43  ;;  %v1959_v63 = vmax.f32 %v1833_v3, 0.0  ;;  %v1996_v50 = vpop.permute.xlu0 %1995 }
 0x424   : > { %2041 = vmatprep.subr.mxu0 %v1930_v22  ;;  %v1917_v35 = vadd.f32 %v1916_v62, %v3140_v41  ;;  %v1986_v46 = vmax.f32 %v1913_v9, 0.0  ;;  %v1977_v22 = vmax.f32 %v1887_v45, 0.0  ;;  %v1976_v62 = vmax.f32 %v1883_v32, 0.0 }
 0x425   : > { %v1918_v21 = vpop.f32.mrf.mxu1  ;;  %v1962_v9 = vmax.f32 %v1841_v38, 0.0  ;;  %v1960_v16 = vmax.f32 %v1835_v6, 0.0  ;;  %v2001_v15 = vrot.slane %v1996_v50, %v2875_v30 }
 0x426   : > { %v1919_v8 = vadd.f32 %v1918_v21, %v3143_v43  ;;  %v1987_v34 = vmax.f32 %v1917_v35, 0.0  ;;  %v1973_v21 = vmax.f32 %v1875_v7, 0.0  ;;  %v1964_v35 = vmax.f32 %v1847_v44, 0.0 }
 0x427   : > { %v1922_v20 = vpop.f32.mrf.mxu1  ;;  %2042 = vmatpush1.xpose.msra.mxu0 %v1929_v12  ;;  %v1974_v12 = vmax.f32 %v1877_v36, 0.0 }
 0x428   : > { %2043 = vmatprep.subr.mxu0 %v1928_v2  ;;  %v1923_v11 = vadd.f32 %v1922_v20, %v3140_v41  ;;  %v1988_v40 = vmax.f32 %v1919_v8, 0.0  ;;  %v1972_v2 = vmax.f32 %v1871_v4, 0.0  ;;  %v1971_v20 = vmax.f32 %v1869_v0, 0.0 }
 0x429   : > { %v1924_v19 = vpop.f32.mrf.mxu1  ;;  %v1967_v8 = vmax.f32 %v1857_v49, 0.0 }
 0x42a   : > { %v1925_v10 = vadd.f32 %v1924_v19, %v3143_v43  ;;  %v1989_v17 = vmax.f32 %v1923_v11, 0.0  ;;  %v1969_v11 = vmax.f32 %v1863_v59, 0.0  ;;  %v1968_v19 = vmax.f32 %v1859_v57, 0.0 }
 0x42b   : > { %2044 = vmatpush1.xpose.msra.mxu0 %v1927_v5  ;;  %v1970_v5 = vmax.f32 %v1865_v27, 0.0 }
 0x42c   : > { %v1990_v18 = vmax.f32 %v1925_v10, 0.0  ;;  %v1966_v10 = vmax.f32 %v1853_v52, 0.0 }
 0x42e   : > { %2045 = vmatprep.subr.mxu0 %v1990_v18  ;;  %v1965_v18 = vmax.f32 %v1851_v33, 0.0 }
 0x42f   : > { %2046 = vmatpush2.xpose.msra.mxu0 %v1989_v17  ;;  %v1963_v17 = vmax.f32 %v1845_v42, 0.0 }
 0x430   : > { %2047 = vmatprep.subr.mxu0 %v1988_v40  ;;  %v1961_v40 = vmax.f32 %v1839_v37, 0.0 }
 0x433   : > { %2048 = vmatpush2.xpose.msra.mxu0 %v1987_v34  ;;  %v2566_v34 = vmov 1966171168  }
 0x434   : > { %2049 = vmatprep.subr.mxu0 %v1986_v46  ;;  %v2088_v43 = vunpack.c.l.s4 %v2566_v34 }
 0x436   : > { %v2089_v46 = vunpack.c.0.s8 %v2088_v43 }
 0x437   : > { %2050 = vmatpush2.xpose.msra.mxu0 %v1985_v29 }
 0x438   : > { %2051 = vmatprep.subr.mxu0 %v1984_v55  ;;  %v2092_v53 = vsub.s32 %v2089_v46, %v2869_v26 }
 0x43b   : > { %2052 = vmatpush2.xpose.msra.mxu0 %v1983_v25 }
 0x43c   : > { %2053 = vmatprep.subr.mxu0 %v1982_v13 }
 0x43f   : > { %2054 = vmatpush2.xpose.msra.mxu0 %v1981_v54 }
 0x440   : > { %2055 = vmatprep.subr.mxu0 %v1980_v31 }
 0x443   : > { %2056 = vmatpush2.xpose.msra.mxu0 %v1979_v24 }
 0x444   : > { %2057 = vmatprep.subr.mxu0 %v1978_v61 }
 0x447   : > { %2058 = vmatpush2.xpose.msra.mxu0 %v1977_v22 }
 0x448   : > { %2059 = vmatprep.subr.mxu0 %v1976_v62 }
 0x44b   : > { %2060 = vmatpush2.xpose.msra.mxu0 %v1975_v1 }
 0x44c   : > { %2061 = vmatprep.subr.mxu0 %v1974_v12 }
 0x44f   : > { %2062 = vmatpush2.xpose.msra.mxu0 %v1973_v21 }
 0x450   : > { %2063 = vmatprep.subr.mxu0 %v1972_v2 }
 0x453   : > { %2064 = vmatpush2.xpose.msra.mxu0 %v1971_v20 }
 0x454   : > { %2065 = vmatprep.subr.mxu0 %v1970_v5 }
 0x457   : > { %2066 = vmatpush2.xpose.msra.mxu0 %v1969_v11 }
 0x458   : > { %2067 = vmatprep.subr.mxu0 %v1968_v19 }
 0x45b   : > { %2068 = vmatpush2.xpose.msra.mxu0 %v1967_v8 }
 0x45c   : > { %2069 = vmatprep.subr.mxu0 %v1966_v10 }
 0x45f   : > { %2070 = vmatpush2.xpose.msra.mxu0 %v1965_v18 }
 0x460   : > { %2071 = vmatprep.subr.mxu0 %v1964_v35 }
 0x463   : > { %2072 = vmatpush2.xpose.msra.mxu0 %v1963_v17 }
 0x464   : > { %2073 = vmatprep.subr.mxu0 %v1962_v9 }
 0x467   : > { %2074 = vmatpush2.xpose.msra.mxu0 %v1961_v40 }
 0x468   : > { %2075 = vmatprep.subr.mxu0 %v1960_v16 }
 0x46b   : > { %2076 = vmatpush2.xpose.msra.mxu0 %v1959_v63 }
 0x46e   : > { %2078 = vmatmul.mubr.f32.vlgmr.msra.gmra.mxu0 %v2006_v60 }
 0x52e   : > { %v2079_v47 = vpop.f32.mrf.mxu0 }
 0x52f   : > { %v2080_v51 = vadd.f32 %v2079_v47, %v2001_v15 }
 0x530   : > { %v2081_v41 = vpop.f32.mrf.mxu0 }
 0x531   : > { %v2082_v29 = vadd.f32 %v2081_v41, %v2001_v15 }
 0x533   : > { %v2086_v55 = vcombine.low %v2080_v51, %v2082_v29 }
 0x535   : > { %v2093_v48 = vrot.slane %v2086_v55, %v2092_v53 }
 0x537   : > { %v2100_v56 = vrot.slane %v2093_v48, %v2092_v53 }
 0x539   : > { %2106 = vst.msk [vmem:[%s464_s27] sm:$0x3] %vm2104_vm0, %v2100_v56 }
 0x53a   : > { %2494 = shalt.err (!%p2491_p5)
}
 0x53b   : > { %s2495_s12 = scalar_lea.hbm %s2120_s26, 32  ;;  %s2499_s3 = scalar_lea.hbm %s3354_s11, 64 }
 0x53c   : > { %p2496_p3 = scmp.ne.s32.totalorder %s2120_s26, %s2495_s12  ;;  %p2500_p8 = scmp.lt.s32.totalorder %s2120_s26, %s3354_s11 }
 0x53d   : > { %p2501_p9 = scmp.lt.s32.totalorder %s2499_s3, %s2495_s12 }
 0x53e   : > { %p2497_p4 = pnand %p2496_p3, %p3379_p12 }
 0x53f   : > { %p2502_p2 = por %p2501_p9, %p2500_p8 }
 0x540   : > { %p2498_p6 = pneg %p2497_p4 }
 0x542   : > { %p2503_p10 = pnand %p2502_p2, %p2498_p6 }
 0x544   : > { %2506 = shalt.err (!%p2503_p10)
}
 0x545   : > { %2272 = dma.vmem_to_hbm [thread:$0]  (%p3379_p12), %s2123_s23, 32, %s2120_s26, %s2108_s14  }
 0x546 PF: > { %s2134_s27 = sand.u32 1, %s2541_s19   ;;  %p3380_p7 = scmp.ne.s32.totalorder %s3364_s25, 0 }
 0x547   : > { %p3381_p1 = scmp.ge.s32.totalorder %s2553_s22, 2  ;;  %s2135_s1 = scalar_lea.sflag [#allocation5], %s2134_s27 }
 0x549   : > { %p2292_p13 = pnand %p3381_p1, %p3380_p7 }
 0x54b   : > { %p2293_p0 = pneg %p2292_p13 }
 0x54d   : > { %2536 = dma.done.wait (%p2293_p0), %s2135_s1, 32  }
 0x54e   : > { %2538 = vsyncadd (%p2293_p0), %s2135_s1, 4294967264  ;;  %p28_p11 = scmp.ge.s32.totalorder %s2731_s13, 4   ;;  %s3382_s19 = smov %s2545_s20 }
 0x54f   : > { %s3383_s20 = smov %s2549_s21  ;;  %s3384_s21 = smov %s2747_s18 }
 0x550   : > { %s3385_s22 = smov %s2731_s13  ;;  %30 = sbr.rel (!%p28_p11) target bundleno = 12 (0xc), region = 125 }
 0x555   :  { %2140 = vsyncpa [#allocation4], 1 }
 0x556   :  { %2142 = vsyncpa [#allocation4 + $0x1], 1 }
 0x557   :  { %2143 = vsyncpa [#allocation7], 1 }
 0x558   :  { %2144 = vsyncpa [#allocation10], 1 }
 0x559   :  { %2145 = vsyncpa [#allocation5], 1 }
 0x55a   :  { %2147 = vsyncpa [#allocation5 + $0x1], 1 }

</bundles_post_ra>
